<compile_context>
chip_gen: v7x
topology: tpu7x:2x2x1
jax: 0.10.0
libtpu: 0.0.40
codegen_flags: <defaults>
</compile_context>

<pallas_src>
import functools

import jax
import jax.numpy as jnp
from jax.experimental import pallas as pl
from jax.experimental.pallas import tpu as pltpu


# ----------------------------------------------------------------------------
# Pallas kernel: one (batch element, query tile) per grid step.
# ----------------------------------------------------------------------------
def transformer_block_kernel(
    q_ref, k_ref, v_ref, mask_ref,                 # q (1,tq,E); k,v (1,S,E); mask (1,1,S)
    wq_ref, wk_ref, wv_ref, wo_ref,                # attention weights (E,E), pre-transposed
    g1_ref, b1_ref, g2_ref, b2_ref,                # layernorm gamma/beta (1,E) f32
    wff1_ref, bff1_ref, wff2_ref, bff2_ref,        # FFN weights (E,F)/(F,E), biases f32
    out_ref,                                       # output (1, tq, E)
    kp_scr, vp_scr,                                # scratch: projected K/V cache (S, E) cdt
    *, heads: int, embed_size: int,
):
    cdt = wq_ref.dtype                              # compute dtype (bf16 or f32)
    head_dim = embed_size // heads
    inv_scale = 1.0 / (float(embed_size) ** 0.5)    # PyTorch divides by sqrt(embed_size)

    qi = pl.program_id(1)

    # --- K/V projections: compute ONCE per batch element, reuse across q-tiles ---
    @pl.when(qi == 0)
    def _():
        k_in = k_ref[0]                             # (S, E) compute dtype
        v_in = v_ref[0]
        kp_scr[...] = jnp.dot(k_in, wk_ref[...],
                              preferred_element_type=jnp.float32).astype(cdt)
        vp_scr[...] = jnp.dot(v_in, wv_ref[...],
                              preferred_element_type=jnp.float32).astype(cdt)

    q_in = q_ref[0]                                 # (tq, E) compute dtype
    q_f32 = q_in.astype(jnp.float32)                # residual path stays f32

    # Additive mask bias, built once per grid step from the (1, S) row mask.
    row_mask = mask_ref[0]                          # (1, S) f32, 1 = keep
    bias = jnp.where(row_mask == 0.0, jnp.float32(-1e20), jnp.float32(0.0))

    # --- Q projection (MXU, f32 accumulation); softmax scale folded into Q ---
    qp = jnp.dot(q_in, wq_ref[...], preferred_element_type=jnp.float32) * inv_scale
    kp = kp_scr[...]                                # (S, E) cdt (cached)
    vp = vp_scr[...]                                # (S, E) cdt (cached)

    # --- per-head attention; fc_out folded into the head loop (no concat) ---
    att_out = jnp.zeros(q_f32.shape, jnp.float32)   # (tq, E)
    for h in range(heads):
        lo = h * head_dim
        qh = qp[:, lo:lo + head_dim].astype(cdt)    # (tq, D)
        kh = kp[:, lo:lo + head_dim]                # (S,  D)
        vh = vp[:, lo:lo + head_dim]                # (S,  D)

        # (tq, S) scores: contract last dims, no explicit transpose.
        scores = jax.lax.dot_general(
            qh, kh, (((1,), (1,)), ((), ())),
            preferred_element_type=jnp.float32)
        scores = scores + bias                      # masked_fill as an add

        m = jnp.max(scores, axis=-1, keepdims=True)
        e = jnp.exp(scores - m)
        attn = (e * pl.reciprocal(jnp.sum(e, axis=-1, keepdims=True),
                                  approx=True)).astype(cdt)

        ctx_h = jnp.dot(attn, vh, preferred_element_type=jnp.float32)     # (tq, D)
        att_out = att_out + jnp.dot(
            ctx_h.astype(cdt), wo_ref[lo:lo + head_dim, :],
            preferred_element_type=jnp.float32)                           # (tq, E)

    # --- residual + LayerNorm1 (single-pass stats, f32; dropout == identity) ---
    x = att_out + q_f32
    mu = jnp.mean(x, axis=-1, keepdims=True)
    var = jnp.mean(x * x, axis=-1, keepdims=True) - mu * mu
    x = (x - mu) * jax.lax.rsqrt(var + 1e-5) * g1_ref[...] + b1_ref[...]   # (tq, E)

    # --- feed-forward:  Linear -> ReLU -> Linear ---
    hdn = jnp.dot(x.astype(cdt), wff1_ref[...],
                  preferred_element_type=jnp.float32) + bff1_ref[...]
    hdn = jnp.maximum(hdn, 0.0)
    ffn = jnp.dot(hdn.astype(cdt), wff2_ref[...],
                  preferred_element_type=jnp.float32) + bff2_ref[...]

    # --- residual + LayerNorm2 ---
    y = ffn + x
    mu2 = jnp.mean(y, axis=-1, keepdims=True)
    var2 = jnp.mean(y * y, axis=-1, keepdims=True) - mu2 * mu2
    y = (y - mu2) * jax.lax.rsqrt(var2 + 1e-5) * g2_ref[...] + b2_ref[...]

    out_ref[0] = y.astype(out_ref.dtype)


# ----------------------------------------------------------------------------
# Wrapper: builds BlockSpecs and launches the kernel, grid = (batch, q-tiles).
# ----------------------------------------------------------------------------
def transformer_block(query, key, value, mask4d, params, *, heads,
                      compute_dtype=jnp.bfloat16):
    N, S, E = query.shape
    F = params["wff1_t"].shape[1]

    # Query-row tiling (row blocks over resident, cached K/V projections).
    if S > 256 and S % 256 == 0:
        tq = 256
    elif S > 128 and S % 128 == 0:
        tq = 128
    else:
        tq = S
    n_qt = S // tq

    # Glue: (N,1,1,S) padding mask -> (N,1,S) f32 row mask (NO S x S broadcast).
    if mask4d is None:
        mask_rows = jnp.ones((N, 1, S), jnp.float32)
    else:
        mask_rows = mask4d.astype(jnp.float32).reshape(N, 1, S)

    cdt = compute_dtype
    q_c = query.astype(cdt)
    k_c = key.astype(cdt)
    v_c = value.astype(cdt)

    def w(name):                       # matmul weights in compute dtype
        return params[name].astype(cdt)

    q_spec = pl.BlockSpec((1, tq, E), lambda b, qi: (b, qi, 0))
    kv_spec = pl.BlockSpec((1, S, E), lambda b, qi: (b, 0, 0))
    mask_spec = pl.BlockSpec((1, 1, S), lambda b, qi: (b, 0, 0))

    def full2d(shape):
        return pl.BlockSpec(shape, lambda b, qi: (0, 0))

    kernel = functools.partial(
        transformer_block_kernel, heads=heads, embed_size=E
    )

    return pl.pallas_call(
        kernel,
        out_shape=jax.ShapeDtypeStruct((N, S, E), query.dtype),
        grid=(N, n_qt),
        in_specs=[
            q_spec, kv_spec, kv_spec, mask_spec,
            full2d((E, E)), full2d((E, E)), full2d((E, E)), full2d((E, E)),
            full2d((1, E)), full2d((1, E)), full2d((1, E)), full2d((1, E)),
            full2d((E, F)), full2d((1, F)), full2d((F, E)), full2d((1, E)),
        ],
        out_specs=pl.BlockSpec((1, tq, E), lambda b, qi: (b, qi, 0)),
        scratch_shapes=[
            pltpu.VMEM((S, E), cdt),     # cached K projection
            pltpu.VMEM((S, E), cdt),     # cached V projection
        ],
        compiler_params=pltpu.CompilerParams(
            # batch axis sharded across cores; q-tile axis sequential so the
            # K/V projection cache (computed at qi == 0) is valid.
            dimension_semantics=("parallel", "arbitrary"),
            vmem_limit_bytes=48 * 1024 * 1024,
        ),
    )(
        q_c, k_c, v_c, mask_rows,
        w("wq_t"), w("wk_t"), w("wv_t"), w("wo_t"),
        params["ln1_g"], params["ln1_b"], params["ln2_g"], params["ln2_b"],
        w("wff1_t"), params["bff1"], w("wff2_t"), params["bff2"],
    )


# ----------------------------------------------------------------------------
# Pure-JAX reference (mirrors the PyTorch forward) for a correctness check.
# ----------------------------------------------------------------------------
def transformer_block_ref(query, key, value, mask4d, params, *, heads):
    N, S, E = query.shape
    D = E // heads

    qp = query @ params["wq_t"]
    kp = key @ params["wk_t"]
    vp = value @ params["wv_t"]

    qh = qp.reshape(N, S, heads, D)
    kh = kp.reshape(N, S, heads, D)
    vh = vp.reshape(N, S, heads, D)

    raw = jnp.einsum("nqhd,nkhd->nhqk", qh, kh)                       # (N, H, S, S)
    raw = jnp.where(mask4d == 0, jnp.float32(-1e20), raw)             # broadcast (N,1,1,S)
    attn = jax.nn.softmax(raw / (E ** 0.5), axis=3)
    ctx = jnp.einsum("nhql,nlhd->nqhd", attn, vh).reshape(N, S, E)
    att_out = ctx @ params["wo_t"]

    def ln(x, g, b):
        mu = jnp.mean(x, axis=-1, keepdims=True)
        var = jnp.mean((x - mu) ** 2, axis=-1, keepdims=True)
        return (x - mu) / jnp.sqrt(var + 1e-5) * g + b

    x = ln(att_out + query, params["ln1_g"], params["ln1_b"])
    h = jnp.maximum(x @ params["wff1_t"] + params["bff1"], 0.0)
    f = h @ params["wff2_t"] + params["bff2"]
    return ln(f + x, params["ln2_g"], params["ln2_b"])


# ----------------------------------------------------------------------------
# Deterministic parameter init + smoke test.
# ----------------------------------------------------------------------------
def make_params(key, embed_size, forward_expansion):
    E = embed_size
    F = forward_expansion * embed_size
    ks = jax.random.split(key, 12)

    def lin(k, out_f, in_f):
        # PyTorch nn.Linear stores (out, in); we transpose so kernel does x @ W.
        return (0.02 * jax.random.normal(k, (out_f, in_f), jnp.float32)).T

    return {
        "wq_t": lin(ks[0], E, E),
        "wk_t": lin(ks[1], E, E),
        "wv_t": lin(ks[2], E, E),
        "wo_t": lin(ks[3], E, E),
        "ln1_g": (1.0 + 0.1 * jax.random.normal(ks[4], (1, E), jnp.float32)),
        "ln1_b": 0.1 * jax.random.normal(ks[5], (1, E), jnp.float32),
        "ln2_g": (1.0 + 0.1 * jax.random.normal(ks[6], (1, E), jnp.float32)),
        "ln2_b": 0.1 * jax.random.normal(ks[7], (1, E), jnp.float32),
        "wff1_t": lin(ks[8], F, E),                 # (E, F)
        "bff1": 0.05 * jax.random.normal(ks[10], (1, F), jnp.float32),
        "wff2_t": lin(ks[9], E, F),                 # (F, E)
        "bff2": 0.05 * jax.random.normal(ks[11], (1, E), jnp.float32),
    }


if __name__ == "__main__":
    # Small, module-consistent shapes.
    N, S, E, heads, forward_expansion = 2, 8, 32, 4, 4
    # dropout p is irrelevant in eval mode (identity).  # TODO(synk): train-mode dropout not implemented.

    root = jax.random.PRNGKey(0)
    k_q, k_k, k_v, k_p = jax.random.split(root, 4)

    query = jax.random.normal(k_q, (N, S, E), jnp.float32)
    key_ = jax.random.normal(k_k, (N, S, E), jnp.float32)
    value = jax.random.normal(k_v, (N, S, E), jnp.float32)

    # Padding-style mask like the PyTorch docstring: (N, 1, 1, S), True = keep.
    valid_lens = jnp.array([6, 8], dtype=jnp.int32)
    mask4d = (jnp.arange(S)[None, :] < valid_lens[:, None]).reshape(N, 1, 1, S)

    params = make_params(k_p, E, forward_expansion)
    ref = transformer_block_ref(query, key_, value, mask4d, params, heads=heads)

    # f32 compute path: tight semantic check against the pure-JAX reference.
    out_f32 = transformer_block(query, key_, value, mask4d, params,
                                heads=heads, compute_dtype=jnp.float32)
    out_f32 = jax.block_until_ready(out_f32)
    assert out_f32.shape == (N, S, E)
    assert jnp.allclose(out_f32, ref, atol=5e-3, rtol=5e-3), "f32 mismatch vs reference"

    # bf16 compute path (default / production): looser tolerance.
    out_bf16 = transformer_block(query, key_, value, mask4d, params,
                                 heads=heads, compute_dtype=jnp.bfloat16)
    out_bf16 = jax.block_until_ready(out_bf16)
    assert out_bf16.shape == (N, S, E)
    assert jnp.allclose(out_bf16, ref, atol=6e-2, rtol=6e-2), "bf16 mismatch vs reference"

    print("KERNEL_OK")
</pallas_src>

<mosaic_0001>
module attributes {stable_mosaic.version = 11 : i64} {
  func.func @transformer_block_kernel(%arg0: i32, %arg1: i32, %arg2: memref<1x8x32xf32, #tpu.memory_space<vmem>>, %arg3: memref<1x8x32xf32, #tpu.memory_space<vmem>>, %arg4: memref<1x8x32xf32, #tpu.memory_space<vmem>>, %arg5: memref<1x1x8xf32, #tpu.memory_space<vmem>>, %arg6: memref<32x32xf32, #tpu.memory_space<vmem>>, %arg7: memref<32x32xf32, #tpu.memory_space<vmem>>, %arg8: memref<32x32xf32, #tpu.memory_space<vmem>>, %arg9: memref<32x32xf32, #tpu.memory_space<vmem>>, %arg10: memref<1x32xf32, #tpu.memory_space<vmem>>, %arg11: memref<1x32xf32, #tpu.memory_space<vmem>>, %arg12: memref<1x32xf32, #tpu.memory_space<vmem>>, %arg13: memref<1x32xf32, #tpu.memory_space<vmem>>, %arg14: memref<32x128xf32, #tpu.memory_space<vmem>>, %arg15: memref<1x128xf32, #tpu.memory_space<vmem>>, %arg16: memref<128x32xf32, #tpu.memory_space<vmem>>, %arg17: memref<1x32xf32, #tpu.memory_space<vmem>>, %arg18: memref<1x8x32xf32, #tpu.memory_space<vmem>>, %arg19: memref<8x32xf32, #tpu.memory_space<vmem>>, %arg20: memref<8x32xf32, #tpu.memory_space<vmem>>) attributes {dimension_semantics = [#tpu.dimension_semantics<parallel>, #tpu.dimension_semantics<arbitrary>], iteration_bounds = array<i64: 2, 1>, scalar_prefetch = 0 : i64, scratch_operands = 2 : i64, tpu.core_type = #tpu.core_type<tc>, window_params = [{transform_indices = @transform_0, window_bounds = array<i64: 1, 8, 32>}, {transform_indices = @transform_1, window_bounds = array<i64: 1, 8, 32>}, {transform_indices = @transform_2, window_bounds = array<i64: 1, 8, 32>}, {transform_indices = @transform_3, window_bounds = array<i64: 1, 1, 8>}, {pipeline_mode = #tpu.pipeline_mode<synchronous>, transform_indices = @transform_4, window_bounds = array<i64: 32, 32>}, {pipeline_mode = #tpu.pipeline_mode<synchronous>, transform_indices = @transform_5, window_bounds = array<i64: 32, 32>}, {pipeline_mode = #tpu.pipeline_mode<synchronous>, transform_indices = @transform_6, window_bounds = array<i64: 32, 32>}, {pipeline_mode = #tpu.pipeline_mode<synchronous>, transform_indices = @transform_7, window_bounds = array<i64: 32, 32>}, {pipeline_mode = #tpu.pipeline_mode<synchronous>, transform_indices = @transform_8, window_bounds = array<i64: 1, 32>}, {pipeline_mode = #tpu.pipeline_mode<synchronous>, transform_indices = @transform_9, window_bounds = array<i64: 1, 32>}, {pipeline_mode = #tpu.pipeline_mode<synchronous>, transform_indices = @transform_10, window_bounds = array<i64: 1, 32>}, {pipeline_mode = #tpu.pipeline_mode<synchronous>, transform_indices = @transform_11, window_bounds = array<i64: 1, 32>}, {pipeline_mode = #tpu.pipeline_mode<synchronous>, transform_indices = @transform_12, window_bounds = array<i64: 32, 128>}, {pipeline_mode = #tpu.pipeline_mode<synchronous>, transform_indices = @transform_13, window_bounds = array<i64: 1, 128>}, {pipeline_mode = #tpu.pipeline_mode<synchronous>, transform_indices = @transform_14, window_bounds = array<i64: 128, 32>}, {pipeline_mode = #tpu.pipeline_mode<synchronous>, transform_indices = @transform_15, window_bounds = array<i64: 1, 32>}, {transform_indices = @transform_16, window_bounds = array<i64: 1, 8, 32>}]} {
    %c0_i32 = arith.constant 0 : i32
    %0 = arith.cmpi eq, %arg1, %c0_i32 : i32
    %1 = arith.extui %0 : i1 to i32
    %c0_i32_0 = arith.constant 0 : i32
    %2 = arith.cmpi ne, %1, %c0_i32_0 : i32
    scf.if %2 {
      %c0_74 = arith.constant 0 : index
      %c0_75 = arith.constant 0 : index
      %c0_76 = arith.constant 0 : index
      %164 = vector.load %arg3[%c0_74, %c0_75, %c0_76] : memref<1x8x32xf32, #tpu.memory_space<vmem>>, vector<1x8x32xf32>
      %165 = vector.shape_cast %164 : vector<1x8x32xf32> to vector<8x32xf32>
      %c0_77 = arith.constant 0 : index
      %c0_78 = arith.constant 0 : index
      %c0_79 = arith.constant 0 : index
      %166 = vector.load %arg4[%c0_77, %c0_78, %c0_79] : memref<1x8x32xf32, #tpu.memory_space<vmem>>, vector<1x8x32xf32>
      %167 = vector.shape_cast %166 : vector<1x8x32xf32> to vector<8x32xf32>
      %c0_80 = arith.constant 0 : index
      %c0_81 = arith.constant 0 : index
      %168 = vector.load %arg7[%c0_80, %c0_81] : memref<32x32xf32, #tpu.memory_space<vmem>>, vector<32x32xf32>
      %cst_82 = arith.constant dense<0.000000e+00> : vector<8x32xf32>
      %169 = tpu.matmul %165, %168, %cst_82 {dimension_numbers = #tpu.dot_dimension_numbers<[1], [0], [0], [1], [0, 0, 1, 1], [], []>} : vector<8x32xf32>, vector<32x32xf32>, vector<8x32xf32> -> vector<8x32xf32>
      %c0_83 = arith.constant 0 : index
      %c0_84 = arith.constant 0 : index
      %170 = vector.load %arg19[%c0_83, %c0_84] : memref<8x32xf32, #tpu.memory_space<vmem>>, vector<8x32xf32>
      tpu.vector_store %arg19[%c0_83, %c0_84], %169 {strides = array<i32>} : memref<8x32xf32, #tpu.memory_space<vmem>>, vector<8x32xf32>,
      %c0_85 = arith.constant 0 : index
      %c0_86 = arith.constant 0 : index
      %171 = vector.load %arg8[%c0_85, %c0_86] : memref<32x32xf32, #tpu.memory_space<vmem>>, vector<32x32xf32>
      %cst_87 = arith.constant dense<0.000000e+00> : vector<8x32xf32>
      %172 = tpu.matmul %167, %171, %cst_87 {dimension_numbers = #tpu.dot_dimension_numbers<[1], [0], [0], [1], [0, 0, 1, 1], [], []>} : vector<8x32xf32>, vector<32x32xf32>, vector<8x32xf32> -> vector<8x32xf32>
      %c0_88 = arith.constant 0 : index
      %c0_89 = arith.constant 0 : index
      %173 = vector.load %arg20[%c0_88, %c0_89] : memref<8x32xf32, #tpu.memory_space<vmem>>, vector<8x32xf32>
      tpu.vector_store %arg20[%c0_88, %c0_89], %172 {strides = array<i32>} : memref<8x32xf32, #tpu.memory_space<vmem>>, vector<8x32xf32>,
    } else {
    }
    %c0 = arith.constant 0 : index
    %c0_1 = arith.constant 0 : index
    %c0_2 = arith.constant 0 : index
    %3 = vector.load %arg2[%c0, %c0_1, %c0_2] : memref<1x8x32xf32, #tpu.memory_space<vmem>>, vector<1x8x32xf32>
    %4 = vector.shape_cast %3 : vector<1x8x32xf32> to vector<8x32xf32>
    %c0_3 = arith.constant 0 : index
    %c0_4 = arith.constant 0 : index
    %c0_5 = arith.constant 0 : index
    %5 = vector.load %arg5[%c0_3, %c0_4, %c0_5] : memref<1x1x8xf32, #tpu.memory_space<vmem>>, vector<1x1x8xf32>
    %6 = vector.shape_cast %5 : vector<1x1x8xf32> to vector<1x8xf32>
    %cst = arith.constant 0.000000e+00 : f32
    %7 = vector.broadcast %cst : f32 to vector<1x8xf32>
    %8 = arith.cmpf oeq, %6, %7 : vector<1x8xf32>
    %cst_6 = arith.constant -1.000000e+20 : f32
    %cst_7 = arith.constant 0.000000e+00 : f32
    %9 = vector.broadcast %cst_6 : f32 to vector<1x8xf32>
    %10 = vector.broadcast %cst_7 : f32 to vector<1x8xf32>
    %11 = arith.select %8, %9, %10 : vector<1x8xi1>, vector<1x8xf32>
    %c0_8 = arith.constant 0 : index
    %c0_9 = arith.constant 0 : index
    %12 = vector.load %arg6[%c0_8, %c0_9] : memref<32x32xf32, #tpu.memory_space<vmem>>, vector<32x32xf32>
    %cst_10 = arith.constant dense<0.000000e+00> : vector<8x32xf32>
    %13 = tpu.matmul %4, %12, %cst_10 {dimension_numbers = #tpu.dot_dimension_numbers<[1], [0], [0], [1], [0, 0, 1, 1], [], []>} : vector<8x32xf32>, vector<32x32xf32>, vector<8x32xf32> -> vector<8x32xf32>
    %cst_11 = arith.constant 0.176776692 : f32
    %14 = vector.broadcast %cst_11 : f32 to vector<8x32xf32>
    %15 = arith.mulf %13, %14 : vector<8x32xf32>
    %c0_12 = arith.constant 0 : index
    %c0_13 = arith.constant 0 : index
    %16 = vector.load %arg19[%c0_12, %c0_13] : memref<8x32xf32, #tpu.memory_space<vmem>>, vector<8x32xf32>
    %c0_14 = arith.constant 0 : index
    %c0_15 = arith.constant 0 : index
    %17 = vector.load %arg20[%c0_14, %c0_15] : memref<8x32xf32, #tpu.memory_space<vmem>>, vector<8x32xf32>
    %cst_16 = arith.constant 0.000000e+00 : f32
    %18 = vector.broadcast %cst_16 : f32 to vector<8x32xf32>
    %19 = vector.extract_strided_slice %15 {offsets = [0, 0], sizes = [8, 8], strides = [1, 1]} : vector<8x32xf32> to vector<8x8xf32>
    %20 = vector.extract_strided_slice %16 {offsets = [0, 0], sizes = [8, 8], strides = [1, 1]} : vector<8x32xf32> to vector<8x8xf32>
    %21 = vector.extract_strided_slice %17 {offsets = [0, 0], sizes = [8, 8], strides = [1, 1]} : vector<8x32xf32> to vector<8x8xf32>
    %cst_17 = arith.constant dense<0.000000e+00> : vector<8x8xf32>
    %22 = tpu.matmul %19, %20, %cst_17 {dimension_numbers = #tpu.dot_dimension_numbers<[1], [1], [0], [0], [0, 0, 1, 0], [], []>} : vector<8x8xf32>, vector<8x8xf32>, vector<8x8xf32> -> vector<8x8xf32>
    %23 = vector.broadcast %11 : vector<1x8xf32> to vector<8x8xf32>
    %24 = arith.addf %22, %23 : vector<8x8xf32>
    %cst_18 = arith.constant dense<0xFF800000> : vector<8xf32>
    %25 = vector.multi_reduction <maximumf>, %24, %cst_18 [1] : vector<8x8xf32> to vector<8xf32>
    %26 = vector.shape_cast %25 : vector<8xf32> to vector<8x1xf32>
    %27 = vector.broadcast %26 : vector<8x1xf32> to vector<8x8xf32>
    %28 = arith.subf %24, %27 : vector<8x8xf32>
    %29 = math.exp %28 : vector<8x8xf32>
    %cst_19 = arith.constant dense<0.000000e+00> : vector<8xf32>
    %30 = vector.multi_reduction <add>, %29, %cst_19 [1] : vector<8x8xf32> to vector<8xf32>
    %31 = vector.shape_cast %30 : vector<8xf32> to vector<8x1xf32>
    %32 = tpu.reciprocal %31 {approx = true} : vector<8x1xf32> -> vector<8x1xf32>
    %33 = vector.broadcast %32 : vector<8x1xf32> to vector<8x8xf32>
    %34 = arith.mulf %29, %33 : vector<8x8xf32>
    %cst_20 = arith.constant dense<0.000000e+00> : vector<8x8xf32>
    %35 = tpu.matmul %34, %21, %cst_20 {dimension_numbers = #tpu.dot_dimension_numbers<[1], [0], [0], [1], [0, 0, 1, 1], [], []>} : vector<8x8xf32>, vector<8x8xf32>, vector<8x8xf32> -> vector<8x8xf32>
    %c0_21 = arith.constant 0 : index
    %c0_22 = arith.constant 0 : index
    %36 = vector.load %arg9[%c0_21, %c0_22] : memref<32x32xf32, #tpu.memory_space<vmem>>, vector<8x32xf32>
    %cst_23 = arith.constant dense<0.000000e+00> : vector<8x32xf32>
    %37 = tpu.matmul %35, %36, %cst_23 {dimension_numbers = #tpu.dot_dimension_numbers<[1], [0], [0], [1], [0, 0, 1, 1], [], []>} : vector<8x8xf32>, vector<8x32xf32>, vector<8x32xf32> -> vector<8x32xf32>
    %38 = arith.addf %18, %37 : vector<8x32xf32>
    %39 = vector.extract_strided_slice %15 {offsets = [0, 8], sizes = [8, 8], strides = [1, 1]} : vector<8x32xf32> to vector<8x8xf32>
    %40 = vector.extract_strided_slice %16 {offsets = [0, 8], sizes = [8, 8], strides = [1, 1]} : vector<8x32xf32> to vector<8x8xf32>
    %41 = vector.extract_strided_slice %17 {offsets = [0, 8], sizes = [8, 8], strides = [1, 1]} : vector<8x32xf32> to vector<8x8xf32>
    %cst_24 = arith.constant dense<0.000000e+00> : vector<8x8xf32>
    %42 = tpu.matmul %39, %40, %cst_24 {dimension_numbers = #tpu.dot_dimension_numbers<[1], [1], [0], [0], [0, 0, 1, 0], [], []>} : vector<8x8xf32>, vector<8x8xf32>, vector<8x8xf32> -> vector<8x8xf32>
    %43 = vector.broadcast %11 : vector<1x8xf32> to vector<8x8xf32>
    %44 = arith.addf %42, %43 : vector<8x8xf32>
    %cst_25 = arith.constant dense<0xFF800000> : vector<8xf32>
    %45 = vector.multi_reduction <maximumf>, %44, %cst_25 [1] : vector<8x8xf32> to vector<8xf32>
    %46 = vector.shape_cast %45 : vector<8xf32> to vector<8x1xf32>
    %47 = vector.broadcast %46 : vector<8x1xf32> to vector<8x8xf32>
    %48 = arith.subf %44, %47 : vector<8x8xf32>
    %49 = math.exp %48 : vector<8x8xf32>
    %cst_26 = arith.constant dense<0.000000e+00> : vector<8xf32>
    %50 = vector.multi_reduction <add>, %49, %cst_26 [1] : vector<8x8xf32> to vector<8xf32>
    %51 = vector.shape_cast %50 : vector<8xf32> to vector<8x1xf32>
    %52 = tpu.reciprocal %51 {approx = true} : vector<8x1xf32> -> vector<8x1xf32>
    %53 = vector.broadcast %52 : vector<8x1xf32> to vector<8x8xf32>
    %54 = arith.mulf %49, %53 : vector<8x8xf32>
    %cst_27 = arith.constant dense<0.000000e+00> : vector<8x8xf32>
    %55 = tpu.matmul %54, %41, %cst_27 {dimension_numbers = #tpu.dot_dimension_numbers<[1], [0], [0], [1], [0, 0, 1, 1], [], []>} : vector<8x8xf32>, vector<8x8xf32>, vector<8x8xf32> -> vector<8x8xf32>
    %c8 = arith.constant 8 : index
    %c0_28 = arith.constant 0 : index
    %56 = vector.load %arg9[%c8, %c0_28] : memref<32x32xf32, #tpu.memory_space<vmem>>, vector<8x32xf32>
    %cst_29 = arith.constant dense<0.000000e+00> : vector<8x32xf32>
    %57 = tpu.matmul %55, %56, %cst_29 {dimension_numbers = #tpu.dot_dimension_numbers<[1], [0], [0], [1], [0, 0, 1, 1], [], []>} : vector<8x8xf32>, vector<8x32xf32>, vector<8x32xf32> -> vector<8x32xf32>
    %58 = arith.addf %38, %57 : vector<8x32xf32>
    %59 = vector.extract_strided_slice %15 {offsets = [0, 16], sizes = [8, 8], strides = [1, 1]} : vector<8x32xf32> to vector<8x8xf32>
    %60 = vector.extract_strided_slice %16 {offsets = [0, 16], sizes = [8, 8], strides = [1, 1]} : vector<8x32xf32> to vector<8x8xf32>
    %61 = vector.extract_strided_slice %17 {offsets = [0, 16], sizes = [8, 8], strides = [1, 1]} : vector<8x32xf32> to vector<8x8xf32>
    %cst_30 = arith.constant dense<0.000000e+00> : vector<8x8xf32>
    %62 = tpu.matmul %59, %60, %cst_30 {dimension_numbers = #tpu.dot_dimension_numbers<[1], [1], [0], [0], [0, 0, 1, 0], [], []>} : vector<8x8xf32>, vector<8x8xf32>, vector<8x8xf32> -> vector<8x8xf32>
    %63 = vector.broadcast %11 : vector<1x8xf32> to vector<8x8xf32>
    %64 = arith.addf %62, %63 : vector<8x8xf32>
    %cst_31 = arith.constant dense<0xFF800000> : vector<8xf32>
    %65 = vector.multi_reduction <maximumf>, %64, %cst_31 [1] : vector<8x8xf32> to vector<8xf32>
    %66 = vector.shape_cast %65 : vector<8xf32> to vector<8x1xf32>
    %67 = vector.broadcast %66 : vector<8x1xf32> to vector<8x8xf32>
    %68 = arith.subf %64, %67 : vector<8x8xf32>
    %69 = math.exp %68 : vector<8x8xf32>
    %cst_32 = arith.constant dense<0.000000e+00> : vector<8xf32>
    %70 = vector.multi_reduction <add>, %69, %cst_32 [1] : vector<8x8xf32> to vector<8xf32>
    %71 = vector.shape_cast %70 : vector<8xf32> to vector<8x1xf32>
    %72 = tpu.reciprocal %71 {approx = true} : vector<8x1xf32> -> vector<8x1xf32>
    %73 = vector.broadcast %72 : vector<8x1xf32> to vector<8x8xf32>
    %74 = arith.mulf %69, %73 : vector<8x8xf32>
    %cst_33 = arith.constant dense<0.000000e+00> : vector<8x8xf32>
    %75 = tpu.matmul %74, %61, %cst_33 {dimension_numbers = #tpu.dot_dimension_numbers<[1], [0], [0], [1], [0, 0, 1, 1], [], []>} : vector<8x8xf32>, vector<8x8xf32>, vector<8x8xf32> -> vector<8x8xf32>
    %c16 = arith.constant 16 : index
    %c0_34 = arith.constant 0 : index
    %76 = vector.load %arg9[%c16, %c0_34] : memref<32x32xf32, #tpu.memory_space<vmem>>, vector<8x32xf32>
    %cst_35 = arith.constant dense<0.000000e+00> : vector<8x32xf32>
    %77 = tpu.matmul %75, %76, %cst_35 {dimension_numbers = #tpu.dot_dimension_numbers<[1], [0], [0], [1], [0, 0, 1, 1], [], []>} : vector<8x8xf32>, vector<8x32xf32>, vector<8x32xf32> -> vector<8x32xf32>
    %78 = arith.addf %58, %77 : vector<8x32xf32>
    %79 = vector.extract_strided_slice %15 {offsets = [0, 24], sizes = [8, 8], strides = [1, 1]} : vector<8x32xf32> to vector<8x8xf32>
    %80 = vector.extract_strided_slice %16 {offsets = [0, 24], sizes = [8, 8], strides = [1, 1]} : vector<8x32xf32> to vector<8x8xf32>
    %81 = vector.extract_strided_slice %17 {offsets = [0, 24], sizes = [8, 8], strides = [1, 1]} : vector<8x32xf32> to vector<8x8xf32>
    %cst_36 = arith.constant dense<0.000000e+00> : vector<8x8xf32>
    %82 = tpu.matmul %79, %80, %cst_36 {dimension_numbers = #tpu.dot_dimension_numbers<[1], [1], [0], [0], [0, 0, 1, 0], [], []>} : vector<8x8xf32>, vector<8x8xf32>, vector<8x8xf32> -> vector<8x8xf32>
    %83 = vector.broadcast %11 : vector<1x8xf32> to vector<8x8xf32>
    %84 = arith.addf %82, %83 : vector<8x8xf32>
    %cst_37 = arith.constant dense<0xFF800000> : vector<8xf32>
    %85 = vector.multi_reduction <maximumf>, %84, %cst_37 [1] : vector<8x8xf32> to vector<8xf32>
    %86 = vector.shape_cast %85 : vector<8xf32> to vector<8x1xf32>
    %87 = vector.broadcast %86 : vector<8x1xf32> to vector<8x8xf32>
    %88 = arith.subf %84, %87 : vector<8x8xf32>
    %89 = math.exp %88 : vector<8x8xf32>
    %cst_38 = arith.constant dense<0.000000e+00> : vector<8xf32>
    %90 = vector.multi_reduction <add>, %89, %cst_38 [1] : vector<8x8xf32> to vector<8xf32>
    %91 = vector.shape_cast %90 : vector<8xf32> to vector<8x1xf32>
    %92 = tpu.reciprocal %91 {approx = true} : vector<8x1xf32> -> vector<8x1xf32>
    %93 = vector.broadcast %92 : vector<8x1xf32> to vector<8x8xf32>
    %94 = arith.mulf %89, %93 : vector<8x8xf32>
    %cst_39 = arith.constant dense<0.000000e+00> : vector<8x8xf32>
    %95 = tpu.matmul %94, %81, %cst_39 {dimension_numbers = #tpu.dot_dimension_numbers<[1], [0], [0], [1], [0, 0, 1, 1], [], []>} : vector<8x8xf32>, vector<8x8xf32>, vector<8x8xf32> -> vector<8x8xf32>
    %c24 = arith.constant 24 : index
    %c0_40 = arith.constant 0 : index
    %96 = vector.load %arg9[%c24, %c0_40] : memref<32x32xf32, #tpu.memory_space<vmem>>, vector<8x32xf32>
    %cst_41 = arith.constant dense<0.000000e+00> : vector<8x32xf32>
    %97 = tpu.matmul %95, %96, %cst_41 {dimension_numbers = #tpu.dot_dimension_numbers<[1], [0], [0], [1], [0, 0, 1, 1], [], []>} : vector<8x8xf32>, vector<8x32xf32>, vector<8x32xf32> -> vector<8x32xf32>
    %98 = arith.addf %78, %97 : vector<8x32xf32>
    %99 = arith.addf %98, %4 : vector<8x32xf32>
    %cst_42 = arith.constant dense<0.000000e+00> : vector<8xf32>
    %100 = vector.multi_reduction <add>, %99, %cst_42 [1] : vector<8x32xf32> to vector<8xf32>
    %101 = vector.shape_cast %100 : vector<8xf32> to vector<8x1xf32>
    %cst_43 = arith.constant 3.200000e+01 : f32
    %102 = vector.broadcast %cst_43 : f32 to vector<8x1xf32>
    %103 = arith.divf %101, %102 : vector<8x1xf32>
    %104 = arith.mulf %99, %99 : vector<8x32xf32>
    %cst_44 = arith.constant dense<0.000000e+00> : vector<8xf32>
    %105 = vector.multi_reduction <add>, %104, %cst_44 [1] : vector<8x32xf32> to vector<8xf32>
    %106 = vector.shape_cast %105 : vector<8xf32> to vector<8x1xf32>
    %cst_45 = arith.constant 3.200000e+01 : f32
    %107 = vector.broadcast %cst_45 : f32 to vector<8x1xf32>
    %108 = arith.divf %106, %107 : vector<8x1xf32>
    %109 = arith.mulf %103, %103 : vector<8x1xf32>
    %110 = arith.subf %108, %109 : vector<8x1xf32>
    %111 = vector.broadcast %103 : vector<8x1xf32> to vector<8x32xf32>
    %112 = arith.subf %99, %111 : vector<8x32xf32>
    %cst_46 = arith.constant 9.99999974E-6 : f32
    %113 = vector.broadcast %cst_46 : f32 to vector<8x1xf32>
    %114 = arith.addf %110, %113 : vector<8x1xf32>
    %115 = math.rsqrt %114 : vector<8x1xf32>
    %116 = vector.broadcast %115 : vector<8x1xf32> to vector<8x32xf32>
    %117 = arith.mulf %112, %116 : vector<8x32xf32>
    %c0_47 = arith.constant 0 : index
    %c0_48 = arith.constant 0 : index
    %118 = vector.load %arg10[%c0_47, %c0_48] : memref<1x32xf32, #tpu.memory_space<vmem>>, vector<1x32xf32>
    %119 = vector.broadcast %118 : vector<1x32xf32> to vector<8x32xf32>
    %120 = arith.mulf %117, %119 : vector<8x32xf32>
    %c0_49 = arith.constant 0 : index
    %c0_50 = arith.constant 0 : index
    %121 = vector.load %arg11[%c0_49, %c0_50] : memref<1x32xf32, #tpu.memory_space<vmem>>, vector<1x32xf32>
    %122 = vector.broadcast %121 : vector<1x32xf32> to vector<8x32xf32>
    %123 = arith.addf %120, %122 : vector<8x32xf32>
    %c0_51 = arith.constant 0 : index
    %c0_52 = arith.constant 0 : index
    %124 = vector.load %arg14[%c0_51, %c0_52] : memref<32x128xf32, #tpu.memory_space<vmem>>, vector<32x128xf32>
    %cst_53 = arith.constant dense<0.000000e+00> : vector<8x128xf32>
    %125 = tpu.matmul %123, %124, %cst_53 {dimension_numbers = #tpu.dot_dimension_numbers<[1], [0], [0], [1], [0, 0, 1, 1], [], []>} : vector<8x32xf32>, vector<32x128xf32>, vector<8x128xf32> -> vector<8x128xf32>
    %c0_54 = arith.constant 0 : index
    %c0_55 = arith.constant 0 : index
    %126 = vector.load %arg15[%c0_54, %c0_55] : memref<1x128xf32, #tpu.memory_space<vmem>>, vector<1x128xf32>
    %127 = vector.broadcast %126 : vector<1x128xf32> to vector<8x128xf32>
    %128 = arith.addf %125, %127 : vector<8x128xf32>
    %cst_56 = arith.constant 0.000000e+00 : f32
    %129 = vector.broadcast %cst_56 : f32 to vector<8x128xf32>
    %130 = arith.maximumf %128, %129 : vector<8x128xf32>
    %c0_57 = arith.constant 0 : index
    %c0_58 = arith.constant 0 : index
    %131 = vector.load %arg16[%c0_57, %c0_58] : memref<128x32xf32, #tpu.memory_space<vmem>>, vector<128x32xf32>
    %cst_59 = arith.constant dense<0.000000e+00> : vector<8x32xf32>
    %132 = tpu.matmul %130, %131, %cst_59 {dimension_numbers = #tpu.dot_dimension_numbers<[1], [0], [0], [1], [0, 0, 1, 1], [], []>} : vector<8x128xf32>, vector<128x32xf32>, vector<8x32xf32> -> vector<8x32xf32>
    %c0_60 = arith.constant 0 : index
    %c0_61 = arith.constant 0 : index
    %133 = vector.load %arg17[%c0_60, %c0_61] : memref<1x32xf32, #tpu.memory_space<vmem>>, vector<1x32xf32>
    %134 = vector.broadcast %133 : vector<1x32xf32> to vector<8x32xf32>
    %135 = arith.addf %132, %134 : vector<8x32xf32>
    %136 = arith.addf %135, %123 : vector<8x32xf32>
    %cst_62 = arith.constant dense<0.000000e+00> : vector<8xf32>
    %137 = vector.multi_reduction <add>, %136, %cst_62 [1] : vector<8x32xf32> to vector<8xf32>
    %138 = vector.shape_cast %137 : vector<8xf32> to vector<8x1xf32>
    %cst_63 = arith.constant 3.200000e+01 : f32
    %139 = vector.broadcast %cst_63 : f32 to vector<8x1xf32>
    %140 = arith.divf %138, %139 : vector<8x1xf32>
    %141 = arith.mulf %136, %136 : vector<8x32xf32>
    %cst_64 = arith.constant dense<0.000000e+00> : vector<8xf32>
    %142 = vector.multi_reduction <add>, %141, %cst_64 [1] : vector<8x32xf32> to vector<8xf32>
    %143 = vector.shape_cast %142 : vector<8xf32> to vector<8x1xf32>
    %cst_65 = arith.constant 3.200000e+01 : f32
    %144 = vector.broadcast %cst_65 : f32 to vector<8x1xf32>
    %145 = arith.divf %143, %144 : vector<8x1xf32>
    %146 = arith.mulf %140, %140 : vector<8x1xf32>
    %147 = arith.subf %145, %146 : vector<8x1xf32>
    %148 = vector.broadcast %140 : vector<8x1xf32> to vector<8x32xf32>
    %149 = arith.subf %136, %148 : vector<8x32xf32>
    %cst_66 = arith.constant 9.99999974E-6 : f32
    %150 = vector.broadcast %cst_66 : f32 to vector<8x1xf32>
    %151 = arith.addf %147, %150 : vector<8x1xf32>
    %152 = math.rsqrt %151 : vector<8x1xf32>
    %153 = vector.broadcast %152 : vector<8x1xf32> to vector<8x32xf32>
    %154 = arith.mulf %149, %153 : vector<8x32xf32>
    %c0_67 = arith.constant 0 : index
    %c0_68 = arith.constant 0 : index
    %155 = vector.load %arg12[%c0_67, %c0_68] : memref<1x32xf32, #tpu.memory_space<vmem>>, vector<1x32xf32>
    %156 = vector.broadcast %155 : vector<1x32xf32> to vector<8x32xf32>
    %157 = arith.mulf %154, %156 : vector<8x32xf32>
    %c0_69 = arith.constant 0 : index
    %c0_70 = arith.constant 0 : index
    %158 = vector.load %arg13[%c0_69, %c0_70] : memref<1x32xf32, #tpu.memory_space<vmem>>, vector<1x32xf32>
    %159 = vector.broadcast %158 : vector<1x32xf32> to vector<8x32xf32>
    %160 = arith.addf %157, %159 : vector<8x32xf32>
    %c0_71 = arith.constant 0 : index
    %c0_72 = arith.constant 0 : index
    %c0_73 = arith.constant 0 : index
    %161 = vector.load %arg18[%c0_71, %c0_72, %c0_73] : memref<1x8x32xf32, #tpu.memory_space<vmem>>, vector<1x8x32xf32>
    %162 = vector.shape_cast %161 : vector<1x8x32xf32> to vector<8x32xf32>
    %163 = vector.shape_cast %160 : vector<8x32xf32> to vector<1x8x32xf32>
    tpu.vector_store %arg18[%c0_71, %c0_72, %c0_73], %163 {strides = array<i32>} : memref<1x8x32xf32, #tpu.memory_space<vmem>>, vector<1x8x32xf32>,
    return
  }
  func.func @transform_0(%arg0: i32, %arg1: i32) -> (i32, i32, i32) {
    %c0_i32 = arith.constant 0 : i32
    %c0_i32_0 = arith.constant 0 : i32
    return %arg0, %arg1, %c0_i32 : i32, i32, i32
  }
  func.func @transform_1(%arg0: i32, %arg1: i32) -> (i32, i32, i32) {
    %c0_i32 = arith.constant 0 : i32
    %c0_i32_0 = arith.constant 0 : i32
    %c0_i32_1 = arith.constant 0 : i32
    return %arg0, %c0_i32, %c0_i32_0 : i32, i32, i32
  }
  func.func @transform_2(%arg0: i32, %arg1: i32) -> (i32, i32, i32) {
    %c0_i32 = arith.constant 0 : i32
    %c0_i32_0 = arith.constant 0 : i32
    %c0_i32_1 = arith.constant 0 : i32
    return %arg0, %c0_i32, %c0_i32_0 : i32, i32, i32
  }
  func.func @transform_3(%arg0: i32, %arg1: i32) -> (i32, i32, i32) {
    %c0_i32 = arith.constant 0 : i32
    %c0_i32_0 = arith.constant 0 : i32
    %c0_i32_1 = arith.constant 0 : i32
    return %arg0, %c0_i32, %c0_i32_0 : i32, i32, i32
  }
  func.func @transform_4(%arg0: i32, %arg1: i32) -> (i32, i32) {
    %c0_i32 = arith.constant 0 : i32
    %c0_i32_0 = arith.constant 0 : i32
    %c0_i32_1 = arith.constant 0 : i32
    return %c0_i32, %c0_i32_0 : i32, i32
  }
  func.func @transform_5(%arg0: i32, %arg1: i32) -> (i32, i32) {
    %c0_i32 = arith.constant 0 : i32
    %c0_i32_0 = arith.constant 0 : i32
    %c0_i32_1 = arith.constant 0 : i32
    return %c0_i32, %c0_i32_0 : i32, i32
  }
  func.func @transform_6(%arg0: i32, %arg1: i32) -> (i32, i32) {
    %c0_i32 = arith.constant 0 : i32
    %c0_i32_0 = arith.constant 0 : i32
    %c0_i32_1 = arith.constant 0 : i32
    return %c0_i32, %c0_i32_0 : i32, i32
  }
  func.func @transform_7(%arg0: i32, %arg1: i32) -> (i32, i32) {
    %c0_i32 = arith.constant 0 : i32
    %c0_i32_0 = arith.constant 0 : i32
    %c0_i32_1 = arith.constant 0 : i32
    return %c0_i32, %c0_i32_0 : i32, i32
  }
  func.func @transform_8(%arg0: i32, %arg1: i32) -> (i32, i32) {
    %c0_i32 = arith.constant 0 : i32
    %c0_i32_0 = arith.constant 0 : i32
    %c0_i32_1 = arith.constant 0 : i32
    return %c0_i32, %c0_i32_0 : i32, i32
  }
  func.func @transform_9(%arg0: i32, %arg1: i32) -> (i32, i32) {
    %c0_i32 = arith.constant 0 : i32
    %c0_i32_0 = arith.constant 0 : i32
    %c0_i32_1 = arith.constant 0 : i32
    return %c0_i32, %c0_i32_0 : i32, i32
  }
  func.func @transform_10(%arg0: i32, %arg1: i32) -> (i32, i32) {
    %c0_i32 = arith.constant 0 : i32
    %c0_i32_0 = arith.constant 0 : i32
    %c0_i32_1 = arith.constant 0 : i32
    return %c0_i32, %c0_i32_0 : i32, i32
  }
  func.func @transform_11(%arg0: i32, %arg1: i32) -> (i32, i32) {
    %c0_i32 = arith.constant 0 : i32
    %c0_i32_0 = arith.constant 0 : i32
    %c0_i32_1 = arith.constant 0 : i32
    return %c0_i32, %c0_i32_0 : i32, i32
  }
  func.func @transform_12(%arg0: i32, %arg1: i32) -> (i32, i32) {
    %c0_i32 = arith.constant 0 : i32
    %c0_i32_0 = arith.constant 0 : i32
    %c0_i32_1 = arith.constant 0 : i32
    return %c0_i32, %c0_i32_0 : i32, i32
  }
  func.func @transform_13(%arg0: i32, %arg1: i32) -> (i32, i32) {
    %c0_i32 = arith.constant 0 : i32
    %c0_i32_0 = arith.constant 0 : i32
    %c0_i32_1 = arith.constant 0 : i32
    return %c0_i32, %c0_i32_0 : i32, i32
  }
  func.func @transform_14(%arg0: i32, %arg1: i32) -> (i32, i32) {
    %c0_i32 = arith.constant 0 : i32
    %c0_i32_0 = arith.constant 0 : i32
    %c0_i32_1 = arith.constant 0 : i32
    return %c0_i32, %c0_i32_0 : i32, i32
  }
  func.func @transform_15(%arg0: i32, %arg1: i32) -> (i32, i32) {
    %c0_i32 = arith.constant 0 : i32
    %c0_i32_0 = arith.constant 0 : i32
    %c0_i32_1 = arith.constant 0 : i32
    return %c0_i32, %c0_i32_0 : i32, i32
  }
  func.func @transform_16(%arg0: i32, %arg1: i32) -> (i32, i32, i32) {
    %c0_i32 = arith.constant 0 : i32
    %c0_i32_0 = arith.constant 0 : i32
    return %arg0, %arg1, %c0_i32 : i32, i32, i32
  }
}

</mosaic_0001>

<bundles_post_ra>
// kernel: tpu_custom_call.1
= control target key start
LH: loop header
LB: loop body
LE: loop exit
PB: predicated region body
PF: predicated region fallthrough
CT: control target
= control target key end

     0   :  { %s3426_s0 = inlined_call_operand.hbm [shape: f32[2,8,32], index: 0, kind: input, shape index: {}]   ;;  %s3427_s1 = inlined_call_operand.hbm [shape: f32[2,8,32], index: 1, kind: input, shape index: {}]   ;;  %s3428_s2 = inlined_call_operand.hbm [shape: f32[2,8,32], index: 2, kind: input, shape index: {}]   ;;  %s3429_s3 = inlined_call_operand.vmem [shape: f32[2,1,8], index: 3, kind: input, shape index: {}]   ;;  %s3430_s4 = inlined_call_operand.vmem [shape: f32[32,32], index: 4, kind: input, shape index: {}]   ;;  %s3431_s5 = inlined_call_operand.vmem [shape: f32[32,32], index: 5, kind: input, shape index: {}]   ;;  %s3432_s6 = inlined_call_operand.vmem [shape: f32[32,32], index: 6, kind: input, shape index: {}]   ;;  %s3433_s7 = inlined_call_operand.vmem [shape: f32[32,32], index: 7, kind: input, shape index: {}]   ;;  %s3434_s8 = inlined_call_operand.vmem [shape: f32[1,32], index: 8, kind: input, shape index: {}]   ;;  %s3435_s9 = inlined_call_operand.vmem [shape: f32[1,32], index: 9, kind: input, shape index: {}]   ;;  %s3436_s10 = inlined_call_operand.vmem [shape: f32[1,32], index: 10, kind: input, shape index: {}]   ;;  %s3437_s11 = inlined_call_operand.vmem [shape: f32[1,32], index: 11, kind: input, shape index: {}]   ;;  %s3438_s12 = inlined_call_operand.vmem [shape: f32[32,128], index: 12, kind: input, shape index: {}]   ;;  %s3439_s13 = inlined_call_operand.vmem [shape: f32[1,128], index: 13, kind: input, shape index: {}]   ;;  %s3440_s14 = inlined_call_operand.vmem [shape: f32[128,32], index: 14, kind: input, shape index: {}]   ;;  %s3441_s15 = inlined_call_operand.vmem [shape: f32[1,32], index: 15, kind: input, shape index: {}]   ;;  %s3442_s16 = inlined_call_operand.hbm [shape: f32[2,8,32], index: 16, kind: output, shape index: {}]  }
   0x1   :  { %3459 = sst [smem:[#allocation21_spill]] %s3426_s0 }
   0x2   :  { %3460 = sst [smem:[#allocation22_spill]] %s3427_s1 }
   0x3   :  { %3461 = sst [smem:[#allocation23_spill]] %s3434_s8 }
   0x4   :  { %3462 = sst [smem:[#allocation24_spill]] %s3435_s9 }
   0x5   :  { %3463 = sst [smem:[#allocation25_spill]] %s3436_s10 }
   0x6   :  { %3464 = sst [smem:[#allocation26_spill]] %s3437_s11 }
   0x7   :  { %3465 = sst [smem:[#allocation27_spill]] %s3438_s12 }
   0x8   :  { %3466 = sst [smem:[#allocation28_spill]] %s3439_s13 }
   0x9   :  { %3467 = sst [smem:[#allocation29_spill]] %s3440_s14 }
   0xa   :  { %3468 = sst [smem:[#allocation30_spill]] %s3441_s15 }
   0xb   :  { %3469 = sst [smem:[#allocation31_spill]] %s3442_s16 }
   0xc   :  { %21 = vsyncpa [#allocation5], 0 }
   0xd   :  { %23 = vsyncpa [#allocation5 + $0x1], 0 }
   0xe   :  { %24 = vsyncpa [#allocation8], 0 }
   0xf   :  { %26 = vsyncpa [#allocation8 + $0x1], 0 }
  0x10   :  { %27 = vsyncpa [#allocation6], 0 }
  0x11   :  { %29 = vsyncpa [#allocation6 + $0x1], 0  ;;  %s2903_s21 = smov 0   ;;  %s2905_s22 = smov 0  }
  0x12   :  { %s2907_s23 = smov 0   ;;  %s2909_s24 = smov 0  }
  0x13   :  { %s2911_s25 = smov 0   ;;  %s2913_s26 = smov 0  }
  0x14 LB: > { %3470 = sst [smem:[#allocation14_spill]] %s2786_s21  ;;  %s2934_s27 = sadd.s32 4294967295, %s2806_s26   ;;  %s2806_s26 = sphi %s2913_s26, %s35_s26   ;;  %s2802_s25 = sphi %s2911_s25, %s3514_s25   ;;  %s2798_s24 = sphi %s2909_s24, %s3509_s24   ;;  %s2794_s23 = sphi %s2907_s23, %s3513_s23   ;;  %s2790_s22 = sphi %s2905_s22, %s3512_s22   ;;  %s2786_s21 = sphi %s2903_s21, %s3511_s21  }
  0x15   : > { %3471 = sst [smem:[#allocation15_spill]] %s2802_s25  ;;  %s2240_s28 = sadd.s32 4294967294, %s2806_s26  }
  0x16   : > { %3472 = sst [smem:[#allocation16_spill]] %s2806_s26  ;;  %s47_s29 = sadd.s32 1, %s2802_s25 }
  0x17   : > { %s56_s30 = sadd.s32 1, %s2794_s23  ;;  %p49_p0 = scmp.ge.s32.totalorder %s47_s29, 2 }
  0x18   : > { %p63_p1 = scmp.ne.s32.totalorder %s2794_s23, %s2790_s22  ;;  %p64_p2 = scmp.eq.s32.totalorder %s2806_s26, 0 }
  0x19   : > { %p69_p3 = scmp.ne.s32.totalorder %s2790_s22, %s2786_s21  ;;  %s3516_s29 = smov (%p49_p0, %s47_s29), 0 }
  0x1a   : > { %3473 = sst [smem:[#allocation17_spill]] %s3516_s29  ;;  %p2946_p4 = por %p64_p2, %p63_p1 }
  0x1b   : > { %p70_p5 = scmp.eq.s32.totalorder %s2934_s27, 0  ;;  %s51_s17 = ssub.s32 %s2802_s25, %s3516_s29 }
  0x1c   : > { %p425_p6 = scmp.eq.s32.totalorder %s2934_s27, 1  ;;  %p54_p7 = scmp.eq.s32.totalorder %s51_s17, 0 }
  0x1d   : > { %p2954_p8 = por %p70_p5, %p69_p3  ;;  %p431_p10 = scmp.eq.s32.totalorder %s2240_s28, 1 }
  0x1e   : > { %p2958_p9 = por %p425_p6, %p63_p1  ;;  %p2554_p13 = scmp.lt.s32.totalorder %s2806_s26, 2 }
  0x1f   : > { %s3475_s18 = scalar_select %p2954_p8, 1, 0 }
  0x20   : > { %s3476_s19 = scalar_select %p2958_p9, 1, 0 }
  0x21   : > { %s2963_s20 = scalar_select %p54_p7, %s2794_s23, %s56_s30  }
  0x22   : > { %3477 = sst [smem:[#allocation18_spill]] %s3476_s19  ;;  %p2965_p11 = por %p431_p10, %p69_p3 }
  0x23   : > { %3478 = sst [smem:[#allocation19_spill]] %s2963_s20  ;;  %s3448_s17 = sand.u32 1, %s2794_s23  }
  0x24   : > { %s3479_s21 = scalar_select %p2965_p11, 1, 0 }
  0x25   : > { %s2974_s29 = sshll.u32 %s3448_s17, 3  ;;  %s2977_s16 = sshll.u32 %s2802_s25, 7 }
  0x26   : > { %3480 = sst [smem:[#allocation20_spill]] %s3479_s21  ;;  %p2981_p0 = pnand %p2554_p13, %p2946_p4 }
  0x27   : > { %s506_s28 = sand.u32 1, %s2806_s26   ;;  %s3482_s1 = sld [smem:[#allocation22_spill]] }
  0x28   : > { %s3481_s11 = scalar_select %p2981_p0, 1, 0 }
  0x29   : > { %s510_s17 = scalar_lea.vmem [#allocation7], %s2974_s29  ;;  %s2997_s0 = scalar_lea.sflag [#allocation8], %s506_s28 }
  0x2a   : > { %s517_s25 = sshll.u32 %s510_s17, 4  ;;  %p3003_p4 = pneg %p2981_p0  ;;  %s2994_s25 = int_to_ptr.vmem [resolvable:$true] %s517_s25 }
  0x2d   : > { %s2990_s21 = scalar_lea.hbm %s3482_s1, %s2977_s16  ;;  %s2635_s17 = scalar_lea.hbm %s3482_s1, 256 }
  0x2e   : > { %s2630_s10 = scalar_lea.hbm %s2990_s21, 128  ;;  %p2636_p7 = scmp.lt.u32.totalorder %s2990_s21, %s3482_s1 }
  0x2f   : > { %p2631_p3 = scmp.ne.s32.totalorder %s2990_s21, %s2630_s10  ;;  %p2637_p10 = scmp.lt.u32.totalorder %s2635_s17, %s2630_s10 }
  0x30   : > { %p2639_p12 = scmp.lt.u32.totalorder %s2630_s10, %s2990_s21 }
  0x31   : > { %p2633_p5 = pnand %p3003_p4, %p2631_p3  ;;  %p2638_p13 = por %p2637_p10, %p2636_p7 }
  0x33   : > { %p2634_p6 = pneg %p2633_p5  ;;  %p2640_p1 = por %p2639_p12, %p2638_p13 }
  0x35   : > { %p2641_p2 = pnand %p2640_p1, %p2634_p6 }
  0x37   : > { %2644 = shalt.err (!%p2641_p2)
}
  0x38   : > { %s2645_s28 = scalar_lea.vmem %s2994_s25, 128  ;;  %s2808_s20 = smov [#allocation7]  }
  0x39   : > { %p2646_p3 = scmp.ne.s32.totalorder %s2994_s25, %s2645_s28  ;;  %s2650_s30 = sshll.u32 %s2808_s20, 4  ;;  %s2651_s30 = int_to_ptr.vmem [resolvable:$false] %s2650_s30 }
  0x3a   : > { %s2652_s13 = scalar_lea.vmem %s2651_s30, 256  ;;  %p2653_p9 = scmp.lt.s32.totalorder %s2994_s25, %s2651_s30 }
  0x3b   : > { %p2648_p5 = pnand %p2646_p3, %p3003_p4  ;;  %p2654_p8 = scmp.lt.s32.totalorder %s2652_s13, %s2645_s28 }
  0x3d   : > { %p2649_p11 = pneg %p2648_p5  ;;  %p2655_p7 = por %p2654_p8, %p2653_p9 }
  0x3f   : > { %p2656_p10 = pnand %p2655_p7, %p2649_p11 }
  0x41   : > { %2659 = shalt.err (!%p2656_p10)
}
  0x42   : > { %2546 = dma.hbm_to_vmem [thread:$0]  (!%p2981_p0), %s2990_s21, 128, %s2994_s25, %s2997_s0  }
  0x43   : > { %p3484_p12 = scmp.lt.s32.totalorder %s2806_s26, 3  ;;  %p3485_p1 = scmp.ge.s32.totalorder %s2806_s26, 1 }
  0x44   : > { %s3487_s28 = sld [smem:[#allocation21_spill]]  ;;  %s491_s30 = scalar_lea.vmem [#allocation4], %s2974_s29 }
  0x45   : > { %p3031_p2 = pnand %p3485_p1, %p3484_p12  ;;  %s499_s13 = sshll.u32 %s491_s30, 4  ;;  %s3042_s13 = int_to_ptr.vmem [resolvable:$true] %s499_s13 }
  0x46   : > { %s3048_s1 = scalar_lea.hbm %s3428_s2, %s2977_s16  ;;  %s3488_s26 = sand.u32 1, %s2794_s23  }
  0x47   : > { %s3486_s10 = scalar_select %p3031_p2, 1, 0 }
  0x48   : > { %s488_s9 = scalar_lea.sflag [#allocation5], %s3488_s26 }
  0x4a   : > { %s3039_s20 = scalar_lea.hbm %s3487_s28, %s2977_s16  ;;  %s2665_s14 = scalar_lea.hbm %s3487_s28, 256 }
  0x4b   : > { %s2660_s8 = scalar_lea.hbm %s3039_s20, 128  ;;  %p2666_p6 = scmp.lt.u32.totalorder %s3039_s20, %s3487_s28 }
  0x4c   : > { %p2661_p8 = scmp.ne.s32.totalorder %s3039_s20, %s2660_s8  ;;  %p2667_p13 = scmp.lt.u32.totalorder %s2665_s14, %s2660_s8 }
  0x4d   : > { %p2669_p5 = scmp.lt.u32.totalorder %s2660_s8, %s3039_s20 }
  0x4e   : > { %p2663_p9 = pnand %p2661_p8, %p3003_p4  ;;  %p2668_p3 = por %p2667_p13, %p2666_p6 }
  0x50   : > { %p2664_p11 = pneg %p2663_p9  ;;  %p2670_p7 = por %p2669_p5, %p2668_p3 }
  0x52   : > { %p2671_p10 = pnand %p2670_p7, %p2664_p11 }
  0x54   : > { %2674 = shalt.err (!%p2671_p10)
}
  0x55   : > { %s2675_s16 = scalar_lea.vmem %s3042_s13, 128  ;;  %s2809_s26 = smov [#allocation4]  }
  0x56   : > { %p2676_p12 = scmp.ne.s32.totalorder %s3042_s13, %s2675_s16  ;;  %s2680_s21 = sshll.u32 %s2809_s26, 4  ;;  %s2681_s21 = int_to_ptr.vmem [resolvable:$false] %s2680_s21 }
  0x57   : > { %s2682_s12 = scalar_lea.vmem %s2681_s21, 256  ;;  %p2683_p9 = scmp.lt.s32.totalorder %s3042_s13, %s2681_s21 }
  0x58   : > { %p2678_p1 = pnand %p2676_p12, %p3003_p4  ;;  %p2684_p2 = scmp.lt.s32.totalorder %s2682_s12, %s2675_s16 }
  0x5a   : > { %p2679_p8 = pneg %p2678_p1  ;;  %p2685_p6 = por %p2684_p2, %p2683_p9 }
  0x5c   : > { %p2686_p13 = pnand %p2685_p6, %p2679_p8 }
  0x5e   : > { %2689 = shalt.err (!%p2686_p13)
}
  0x5f   : > { %2543 = dma.hbm_to_vmem [thread:$0]  (!%p2981_p0), %s3039_s20, 128, %s3042_s13, %s488_s9  }
  0x60   : > { %s528_s8 = scalar_lea.vmem [#allocation9], %s2974_s29  ;;  %s2690_s25 = scalar_lea.hbm %s3048_s1, 128 }
  0x61   : > { %s535_s14 = sshll.u32 %s528_s8, 4  ;;  %p2691_p11 = scmp.ne.s32.totalorder %s3048_s1, %s2690_s25  ;;  %s536_s14 = int_to_ptr.vmem [resolvable:$true] %s535_s14 }
  0x62   : > { %s2695_s30 = scalar_lea.hbm %s3428_s2, 256  ;;  %p2696_p5 = scmp.lt.u32.totalorder %s3048_s1, %s3428_s2 }
  0x63   : > { %p2693_p2 = pnand %p2691_p11, %p3003_p4  ;;  %p2697_p7 = scmp.lt.u32.totalorder %s2695_s30, %s2690_s25 }
  0x64   : > { %p2699_p12 = scmp.lt.u32.totalorder %s2690_s25, %s3048_s1 }
  0x65   : > { %p2694_p3 = pneg %p2693_p2  ;;  %p2698_p10 = por %p2697_p7, %p2696_p5 }
  0x67   : > { %p2700_p1 = por %p2699_p12, %p2698_p10 }
  0x69   : > { %p2701_p8 = pnand %p2700_p1, %p2694_p3 }
  0x6b   : > { %2704 = shalt.err (!%p2701_p8)
}
  0x6c   : > { %s2705_s9 = scalar_lea.vmem %s536_s14, 128  ;;  %s2810_s29 = smov [#allocation9]  }
  0x6d   : > { %p2706_p9 = scmp.ne.s32.totalorder %s536_s14, %s2705_s9  ;;  %s2710_s20 = sshll.u32 %s2810_s29, 4  ;;  %s2711_s20 = int_to_ptr.vmem [resolvable:$false] %s2710_s20 }
  0x6e   : > { %s2712_s13 = scalar_lea.vmem %s2711_s20, 256  ;;  %p2713_p11 = scmp.lt.s32.totalorder %s536_s14, %s2711_s20 }
  0x6f   : > { %p2708_p6 = pnand %p2706_p9, %p3003_p4  ;;  %p2714_p2 = scmp.lt.s32.totalorder %s2712_s13, %s2705_s9 }
  0x71   : > { %p2709_p13 = pneg %p2708_p6  ;;  %p2715_p0 = por %p2714_p2, %p2713_p11 }
  0x73   : > { %p2716_p5 = pnand %p2715_p0, %p2709_p13 }
  0x75   : > { %2719 = shalt.err (!%p2716_p5)
}
  0x76   : > { %p3489_p7 = scmp.ne.s32.totalorder %s3481_s11, 0  ;;  %p3490_p3 = scmp.ne.s32.totalorder %s3486_s10, 0 }
  0x77   : > { %s3095_s19 = sand.u32 (!%p3490_p3), 1, %s2790_s22   ;;  %p3491_p0 = scmp.ne.s32.totalorder (!%p3490_p3), %s3475_s18, 0 }
  0x78   : > { %2549 = dma.hbm_to_vmem [thread:$0]  (!%p3489_p7), %s3048_s1, 128, %s536_s14, %s2997_s0  }
  0x79   : > { %550 = sbr.rel (%p3490_p3) target bundleno = 3503 (0xdaf), region = 84  ;;  %s3098_s21 = sshll.u32 (!%p3490_p3), %s3095_s19, 3 }
  0x7a   : > { %s553_s12 = scalar_lea.sflag (!%p3490_p3), [#allocation5], %s3095_s19  ;;  %s556_s8 = scalar_lea.vmem (!%p3490_p3), [#allocation4], %s3098_s21 }
  0x80   : > { %2773 = dma.done.wait (%p3491_p0), %s553_s12, 128  }
  0x81   : > { %2775 = vsyncadd (%p3491_p0), %s553_s12, 4294967168  ;;  %s561_s1 = sand.u32 1, %s2934_s27   ;;  %s565_s0 = scalar_lea.vmem [#allocation7], %s3098_s21 }
  0x82   : > { %s562_s11 = scalar_lea.sflag [#allocation8], %s561_s1 }
  0x83   : > { %2777 = dma.done.wait (%p3491_p0), %s562_s11, 256  }
  0x84   : > { %2779 = vsyncadd (%p3491_p0), %s562_s11, 4294967040  ;;  %v2811_v0 = vmov 0.0|0.0   ;;  %vm2812_vm0 = vmmov 0   ;;  %v2813_v1 = vmov 0.0   ;;  %v645_v2 = vld [vmem:[%s3431_s5] sm:$0xff]  ;;  %v646_v3 = vld [vmem:[%s3431_s5 + $0x8] sm:$0xff]  ;;  %v888_v34 = vlaneseq }
  0x85   : > { %2484 = vmatprep.subr.bf16.mxu0 %v2811_v0  ;;  %2353 = vmatprep.mubr.msk.f32.mxu0 %vm2812_vm0, %v2813_v1  ;;  %v647_v4 = vld [vmem:[%s3431_s5 + $0x10] sm:$0xff]  ;;  %v2485_v5 = vpack.c.bf16 %v646_v3, %v645_v2  ;;  %v648_v6 = vld [vmem:[%s3431_s5 + $0x18] sm:$0xff]  ;;  %v724_v8 = vld [vmem:[%s3432_s6] sm:$0xff]  ;;  %vm649_vm1 = vcmask 261120   ;;  %s574_s14 = scalar_lea.vmem [#allocation9], %s3098_s21  ;;  %vm893_vm2 = vcmask 64512  }
  0x86   : > { %2383 = vmatprep.subr.mxu1 %v2813_v1  ;;  %2385 = vmatprep.mubr.msk.f32.mxu1 %vm2812_vm0, %v2813_v1  ;;  %v2488_v7 = vpack.c.bf16 %v648_v6, %v647_v4  ;;  %v725_v9 = vld [vmem:[%s3432_s6 + $0x8] sm:$0xff]  ;;  %v726_v12 = vld [vmem:[%s3432_s6 + $0x10] sm:$0xff]  ;;  %v727_v13 = vld [vmem:[%s3432_s6 + $0x18] sm:$0xff]  ;;  %p636_p4 = scmp.lt.s32.totalorder %s2798_s24, 1  ;;  %v889_v36 = vshrl.u32 %v888_v34, 7  ;;  %s2815_s29 = smov 112  }
  0x87   : > { %2486 = vmatpush3.bf16.msra.mxu0 %v2485_v5  ;;  %v643_v10 = vld [vmem:[%s565_s0] sm:$0xff]  ;;  %v2491_v11 = vpack.c.bf16 %v725_v9, %v724_v8  ;;  %v2494_v14 = vpack.c.bf16 %v727_v13, %v726_v12  ;;  %v644_v17 = vld [vmem:[%s574_s14] sm:$0xff]  ;;  %s2816_s20 = smov 104   ;;  %s3492_s15 = sld [smem:[#allocation27_spill]] }
  0x88   : > { %2487 = vmatprep.subr.bf16.mxu0 %v2811_v0  ;;  %v806_v15 = vld [vmem:[%s3430_s4] sm:$0xff]  ;;  %v807_v16 = vld [vmem:[%s3430_s4 + $0x8] sm:$0xff]  ;;  %v808_v19 = vld [vmem:[%s3430_s4 + $0x10] sm:$0xff]  ;;  %s637_s30 = scalar_select %p636_p4, %s2798_s24, 1  ;;  %v890_v37 = vsub.s32 0, %v889_v36 }
  0x89   : > { %v2497_v18 = vpack.c.bf16 %v807_v16, %v806_v15  ;;  %v809_v20 = vld [vmem:[%s3430_s4 + $0x18] sm:$0xff]  ;;  %v1221_v61 = vld [vmem:[%s3433_s7 + $0x8] sm:$0xff]  ;;  %v1054_v4 = vld [vmem:[%s3433_s7] sm:$0xff]  ;;  %s3493_s13 = sld [smem:[#allocation29_spill]]  ;;  %s3496_s27 = sld [smem:[#allocation28_spill]] }
  0x8a   : > { %v2500_v21 = vpack.c.bf16 %v809_v20, %v808_v19  ;;  %v3168_v22 = vld [vmem:[%s556_s8] sm:$0xff]  ;;  %s2814_s8 = smov 120   ;;  %s638_s9 = scalar_lea.vmem %s3429_s3, %s637_s30 }
  0x8b   : > { %2489 = vmatpush3.bf16.msra.mxu0 %v2488_v7  ;;  %v803_v35 = vld [vmem:[%s638_s9] sm:$0x1]  ;;  %s3494_s30 = sld [smem:[#allocation23_spill]]  ;;  %s3495_s9 = sld [smem:[#allocation24_spill]] }
  0x8c   : > { %2490 = vmatprep.subr.bf16.mxu0 %v2811_v0  ;;  %vm804_vm3 = vcmp.eq.f32.partialorder %v803_v35, 0.0  ;;  %s3497_s18 = sld [smem:[#allocation30_spill]]  ;;  %s3498_s25 = sld [smem:[#allocation18_spill]] }
  0x8d   : > { %v805_v38 = vsel %vm804_vm3, -1e+20, %v2813_v1  ;;  %s3501_s0 = sld [smem:[#allocation31_spill]]  ;;  %s2093_s10 = scalar_lea.sflag [#allocation6], %s3095_s19 }
  0x8e   : > { %2354 = vmatmul.mubr.msk.f32.vlgmr.msra.gmra.mrb[0].mxu0 %vm649_vm1, %v643_v10  ;;  %v3203_v39 = vrot.slane %v805_v38, %v890_v37 }
  0x8f   : > { %2492 = vmatpush3.bf16.msra.mxu0 %v2491_v11  ;;  %2364 = vmatprep.mubr.msk.f32.mxu0 %vm2812_vm0, %v2813_v1 }
  0x90   : > { %2493 = vmatprep.subr.bf16.mxu0 %v2811_v0 }
  0x92   : > { %p3502_p12 = scmp.ne.s32.totalorder %s3498_s25, 0 }
  0x93   : > { %2495 = vmatpush3.bf16.msra.mxu0 %v2494_v14 }
  0x94   : > { %2496 = vmatprep.subr.bf16.mxu0 %v2811_v0 }
  0x96   : > { %2365 = vmatmul.mubr.msk.f32.vlgmr.msra.gmra.mrb[2].mxu0 %vm649_vm1, %v644_v17 }
  0x97   : > { %2498 = vmatpush3.bf16.msra.mxu0 %v2497_v18  ;;  %2375 = vmatprep.mubr.msk.f32.mxu0 %vm2812_vm0, %v2813_v1 }
  0x98   : > { %2499 = vmatprep.subr.bf16.mxu0 %v2811_v0 }
  0x9b   : > { %2501 = vmatpush3.bf16.msra.mxu0 %v2500_v21 }
  0x9c   : > { %2378 = vmatprep.subr.mxu0 %v2813_v1 }
  0x9e   : > { %2376 = vmatmul.mubr.msk.f32.vlgmr.msra.gmra.mrb[4].mxu0 %vm649_vm1, %v3168_v22 }
  0x9f   : > { %2380 = vmatprep.mubr.msk.f32.mxu0 %vm2812_vm0, %v2813_v1 }
 0x161   : > { %v719_v23 = vpop.f32.mrb[0].mxu0 }
 0x162   : > { %723 = vst.msk [vmem:[#allocation2] sm:$0xff] %vm649_vm1, %v719_v23  ;;  %v2355_v24 = vpop.f32.mrb[1].mxu0 }
 0x169   : > { %v797_v25 = vpop.f32.mrb[2].mxu0  ;;  %v885_v26 = vld [vmem:[#allocation2] sm:$0xff] }
 0x16a   : > { %801 = vst.msk [vmem:[#allocation3] sm:$0xff] %vm649_vm1, %v797_v25  ;;  %v2366_v27 = vpop.f32.mrb[3].mxu0  ;;  %1057 = vrot.lane.b32.xlu0 %v885_v26, %s2814_s8  ;;  %2379 = vmatpush3.xpose.msk.msra.mxu0 %vm893_vm2, %v885_v26 }
 0x16b   : > { %2388 = vmatprep.subr.mxu0 %v2813_v1 }
 0x171   : > { %v880_v28 = vpop.f32.mrb[4].mxu0  ;;  %v3180_v29 = vld [vmem:[#allocation3] sm:$0xff] }
 0x172   : > { %v3182_v30 = vmul.f32 0.17677669, %v880_v28  ;;  %v2377_v31 = vpop.f32.mrb[5].mxu0  ;;  %2384 = vmatpush3.msra.mxu1 %v3180_v29 }
 0x173   : > { %2393 = vmatprep.subr.mxu1 %v2813_v1 }
 0x174   : > { %1055 = vrot.lane.b32.xlu0 %v3182_v30, %s2814_s8  ;;  %2381 = vmatmul.mubr.msk.f32.vlgmr.msra.gmra.mrb[6].mxu0 %vm893_vm2, %v3182_v30 }
 0x175   : > { %2390 = vmatprep.mubr.msk.f32.mxu0 %vm2812_vm0, %v2813_v1 }
 0x1dc   : > { %v1058_v32 = vpop.permute.xlu0 %1057 }
 0x1dd   : > { %2389 = vmatpush3.xpose.msk.msra.mxu0 %vm893_vm2, %v1058_v32 }
 0x1de   : > { %2398 = vmatprep.subr.mxu0 %v2813_v1 }
 0x1e6   : > { %v1056_v33 = vpop.permute.xlu0 %1055 }
 0x1e7   : > { %2391 = vmatmul.mubr.msk.f32.vlgmr.msra.gmra.mrb[8].mxu0 %vm893_vm2, %v1056_v33 }
 0x1e8   : > { %2400 = vmatprep.mubr.msk.f32.mxu0 %vm2812_vm0, %v2813_v1  ;;  %2399 = vmatpush3.msra.mxu0 %v1221_v61  ;;  %v1881_v61 = vld [vmem:[%s3492_s15] sm:$0xff] }
 0x1e9   : > { %2408 = vmatprep.subr.mxu0 %v2813_v1 }
 0x247   : > { %v966_v40 = vpop.f32.mrb[6].mxu0 }
 0x248   : > { %v967_v41 = vadd.f32 %v966_v40, %v3203_v39  ;;  %v2382_v42 = vpop.f32.mrb[7].mxu0 }
 0x24a   : > { %v970_v43 = vsel %vm893_vm2, %v967_v41, -inf }
 0x24b   : > { %971 = vmax.xlane.f32.xlu1 %v970_v43 }
 0x2ba   : > { %v1129_v44 = vpop.f32.mrb[8].mxu0 }
 0x2bb   : > { %v1130_v45 = vadd.f32 %v1129_v44, %v3203_v39  ;;  %v2392_v46 = vpop.f32.mrb[9].mxu0 }
 0x2bc   : > { %v1773_v46 = vld [vmem:[%s3433_s7 + $0x18] sm:$0xff] }
 0x2bd   : > { %v1133_v47 = vsel %vm893_vm2, %v1130_v45, -inf }
 0x2be   : > { %1134 = vmax.xlane.f32.xlu1 %v1133_v47 }
 0x2d8   : > { %v972_v48 = vpop.xlane.xlu1 %971 }
 0x2d9   : > { %v973_v49 = vsub.f32 %v967_v41, %v972_v48 }
 0x2db   : > { %v974_v50 = vmul.f32 1.442695, %v973_v49 }
 0x2dd   : > { %2610 = vpow2.f32 %v974_v50 }
 0x2e7   : > { %v2611_v51 = vpop.eup %2610 }
 0x2e8   : > { %v976_v52 = vsel %vm893_vm2, %v2611_v51, 0.0 }
 0x2e9   : > { %977 = vadd.xlane.f32.xlu0 %v976_v52 }
 0x2ff   : > { %1457 = vrot.lane.b32.xlu0 %v3180_v29, %s2815_s29 }
 0x303   : > { %1610 = vrot.lane.b32.xlu0 %v885_v26, %s2816_s20 }
 0x34b   : > { %v1135_v53 = vpop.xlane.xlu1 %1134 }
 0x34c   : > { %v1136_v54 = vsub.f32 %v1130_v45, %v1135_v53 }
 0x34e   : > { %v1137_v55 = vmul.f32 1.442695, %v1136_v54 }
 0x350   : > { %2612 = vpow2.f32 %v1137_v55 }
 0x35a   : > { %v2613_v56 = vpop.eup %2612 }
 0x35b   : > { %v1139_v57 = vsel %vm893_vm2, %v2613_v56, 0.0 }
 0x35c   : > { %1140 = vadd.xlane.f32.xlu1 %v1139_v57 }
 0x36d   : > { %1145 = vrot.lane.b32.xlu1 %v3180_v29, %s2814_s8 }
 0x371   : > { %1370 = vrot.lane.b32.xlu1 %v885_v26, %s2815_s29 }
 0x375   : > { %1368 = vrot.lane.b32.xlu1 %v3182_v30, %s2815_s29  ;;  %s2281_s29 = sshll.u32 %s2798_s24, 7  ;;  %s2817_s24 = smov [#allocation10]  }
 0x376   : > { %v978_v58 = vpop.xlane.xlu0 %977 }
 0x377   : > { %2614 = vrcp.f32 %v978_v58 }
 0x37a   : > { %v1458_v6 = vpop.permute.xlu0 %1457 }
 0x37e   : > { %v1611_v27 = vpop.permute.xlu0 %1610 }
 0x381   : > { %v2615_v59 = vpop.eup %2614 }
 0x382   : > { %v980_v60 = vmul.f32 %v2615_v59, %v2611_v51 }
 0x384   : > { %2386 = vmatmul.mubr.msk.f32.vlgmr.msra.gmra.mrb[0].mxu1 %vm893_vm2, %v980_v60 }
 0x385   : > { %2395 = vmatprep.mubr.msk.f32.mxu1 %vm2812_vm0, %v2813_v1 }
 0x3e9   : > { %v1141_v62 = vpop.xlane.xlu1 %1140 }
 0x3ea   : > { %2616 = vrcp.f32 %v1141_v62 }
 0x3ed   : > { %v1146_v63 = vpop.permute.xlu1 %1145 }
 0x3ee   : > { %2394 = vmatpush3.msra.mxu1 %v1146_v63  ;;  %v1884_v63 = vld [vmem:[%s3492_s15 + $0x18] sm:$0xff] }
 0x3ef   : > { %2403 = vmatprep.subr.mxu1 %v2813_v1 }
 0x3f1   : > { %v1371_v8 = vpop.permute.xlu1 %1370 }
 0x3f4   : > { %v2617_v2 = vpop.eup %2616 }
 0x3f5   : > { %v1143_v3 = vmul.f32 %v2617_v2, %v2613_v56  ;;  %v1369_v11 = vpop.permute.xlu1 %1368 }
 0x3f7   : > { %2396 = vmatmul.mubr.msk.f32.vlgmr.msra.gmra.mrb[2].mxu1 %vm893_vm2, %v1143_v3  ;;  %v1966_v3 = vld [vmem:[%s3493_s13] sm:$0xff] }
 0x3f8   : > { %2404 = vmatpush3.msra.mxu1 %v1054_v4  ;;  %2405 = vmatprep.mubr.msk.f32.mxu1 %vm2812_vm0, %v2813_v1  ;;  %v1967_v4 = vld [vmem:[%s3493_s13 + $0x8] sm:$0xff] }
 0x3f9   : > { %2413 = vmatprep.subr.mxu1 %v2813_v1 }
 0x457   : > { %v1050_v5 = vpop.f32.mrb[0].mxu1 }
 0x458   : > { %v2387_v7 = vpop.f32.mrb[1].mxu1  ;;  %2406 = vmatmul.mubr.msk.f32.vlgmr.msra.gmra.mrb[4].mxu1 %vm893_vm2, %v1050_v5  ;;  %v1968_v5 = vld [vmem:[%s3493_s13 + $0x10] sm:$0xff] }
 0x459   : > { %2414 = vmatpush3.msra.mxu1 %v1458_v6  ;;  %2415 = vmatprep.mubr.msk.f32.mxu1 %vm2812_vm0, %v2813_v1  ;;  %v2509_v6 = vpack.c.bf16 %v1967_v4, %v1966_v3  ;;  %v1969_v7 = vld [vmem:[%s3493_s13 + $0x18] sm:$0xff] }
 0x45a   : > { %2423 = vmatprep.subr.mxu1 %v2813_v1 }
 0x4ca   : > { %v1217_v9 = vpop.f32.mrb[2].mxu1 }
 0x4cb   : > { %v2397_v10 = vpop.f32.mrb[3].mxu1  ;;  %2401 = vmatmul.mubr.msk.f32.vlgmr.msra.gmra.mrb[10].mxu0 %vm893_vm2, %v1217_v9  ;;  %v1970_v9 = vld [vmem:[%s3493_s13 + $0x20] sm:$0xff] }
 0x4cc   : > { %2409 = vmatpush3.xpose.msk.msra.mxu0 %vm893_vm2, %v1371_v8  ;;  %2410 = vmatprep.mubr.msk.f32.mxu0 %vm2812_vm0, %v2813_v1  ;;  %v2512_v8 = vpack.c.bf16 %v1969_v7, %v1968_v5  ;;  %v1971_v10 = vld [vmem:[%s3493_s13 + $0x28] sm:$0xff] }
 0x4cd   : > { %2418 = vmatprep.subr.mxu0 %v2813_v1 }
 0x4cf   : > { %2411 = vmatmul.mubr.msk.f32.vlgmr.msra.gmra.mrb[12].mxu0 %vm893_vm2, %v1369_v11  ;;  %v2515_v11 = vpack.c.bf16 %v1971_v10, %v1970_v9 }
 0x4d0   : > { %2420 = vmatprep.mubr.msk.f32.mxu0 %vm2812_vm0, %v2813_v1 }
 0x52b   : > { %v1364_v12 = vpop.f32.mrb[4].mxu1 }
 0x52c   : > { %v2407_v13 = vpop.f32.mrb[5].mxu1 }
 0x52d   : > { %v1973_v13 = vld [vmem:[%s3493_s13 + $0x38] sm:$0xff] }
 0x59e   : > { %v1291_v14 = vpop.f32.mrb[10].mxu0 }
 0x59f   : > { %v1365_v15 = vadd.f32 %v1364_v12, %v1291_v14  ;;  %v2402_v16 = vpop.f32.mrb[11].mxu0  ;;  %v1972_v12 = vld [vmem:[%s3493_s13 + $0x30] sm:$0xff] }
 0x5a0   : > { %v2518_v14 = vpack.c.bf16 %v1973_v13, %v1972_v12  ;;  %v1975_v16 = vld [vmem:[%s3493_s13 + $0x48] sm:$0xff] }
 0x5a2   : > { %v1442_v17 = vpop.f32.mrb[12].mxu0 }
 0x5a3   : > { %v1443_v18 = vadd.f32 %v1442_v17, %v3203_v39  ;;  %v2412_v19 = vpop.f32.mrb[13].mxu0 }
 0x5a4   : > { %v1977_v19 = vld [vmem:[%s3493_s13 + $0x58] sm:$0xff] }
 0x5a5   : > { %v1446_v20 = vsel %vm893_vm2, %v1443_v18, -inf }
 0x5a6   : > { %1447 = vmax.xlane.f32.xlu1 %v1446_v20 }
 0x633   : > { %v1448_v21 = vpop.xlane.xlu1 %1447 }
 0x634   : > { %v1449_v23 = vsub.f32 %v1443_v18, %v1448_v21  ;;  %v1976_v18 = vld [vmem:[%s3493_s13 + $0x50] sm:$0xff]  ;;  %v1978_v21 = vld [vmem:[%s3493_s13 + $0x60] sm:$0xff] }
 0x635   : > { %v2524_v20 = vpack.c.bf16 %v1977_v19, %v1976_v18 }
 0x636   : > { %v1450_v24 = vmul.f32 1.442695, %v1449_v23  ;;  %v1979_v23 = vld [vmem:[%s3493_s13 + $0x68] sm:$0xff] }
 0x638   : > { %2618 = vpow2.f32 %v1450_v24  ;;  %v2527_v24 = vpack.c.bf16 %v1979_v23, %v1978_v21 }
 0x642   : > { %v2619_v25 = vpop.eup %2618 }
 0x643   : > { %v1452_v26 = vsel %vm893_vm2, %v2619_v25, 0.0 }
 0x644   : > { %1453 = vadd.xlane.f32.xlu0 %v1452_v26 }
 0x65a   : > { %1608 = vrot.lane.b32.xlu0 %v3182_v30, %s2816_s20  ;;  %v1533_v30 = vld [vmem:[%s3433_s7 + $0x10] sm:$0xff] }
 0x65b   : > { %2419 = vmatpush3.msra.mxu0 %v1533_v30 }
 0x65c   : > { %2428 = vmatprep.subr.mxu0 %v2813_v1 }
 0x6d1   : > { %v1454_v28 = vpop.xlane.xlu0 %1453 }
 0x6d2   : > { %2620 = vrcp.f32 %v1454_v28 }
 0x6d5   : > { %v1609_v33 = vpop.permute.xlu0 %1608 }
 0x6dc   : > { %v2621_v31 = vpop.eup %2620 }
 0x6dd   : > { %v1456_v32 = vmul.f32 %v2621_v31, %v2619_v25 }
 0x6df   : > { %2416 = vmatmul.mubr.msk.f32.vlgmr.msra.gmra.mrb[6].mxu1 %vm893_vm2, %v1456_v32 }
 0x6e0   : > { %2424 = vmatpush3.xpose.msk.msra.mxu1 %vm893_vm2, %v1611_v27  ;;  %2425 = vmatprep.mubr.msk.f32.mxu1 %vm2812_vm0, %v2813_v1 }
 0x6e1   : > { %2433 = vmatprep.subr.mxu1 %v2813_v1 }
 0x6e3   : > { %2426 = vmatmul.mubr.msk.f32.vlgmr.msra.gmra.mrb[8].mxu1 %vm893_vm2, %v1609_v33 }
 0x6e4   : > { %2435 = vmatprep.mubr.msk.f32.mxu1 %vm2812_vm0, %v2813_v1  ;;  %2434 = vmatpush3.msra.mxu1 %v1773_v46 }
 0x6e5   : > { %2508 = vmatprep.subr.bf16.mxu1 %v2811_v0 }
 0x7b2   : > { %v1529_v34 = vpop.f32.mrb[6].mxu1 }
 0x7b3   : > { %v2417_v35 = vpop.f32.mrb[7].mxu1  ;;  %2421 = vmatmul.mubr.msk.f32.vlgmr.msra.gmra.mrb[14].mxu0 %vm893_vm2, %v1529_v34 }
 0x7b4   : > { %2430 = vmatprep.mubr.msk.f32.mxu0 %vm2812_vm0, %v2813_v1  ;;  %v2273_v35 = vld [vmem:[%s3494_s30] ss:$0 sm:$0xff]  ;;  %s3499_s30 = sld [smem:[#allocation25_spill]] }
 0x7b6   : > { %v1682_v36 = vpop.f32.mrb[8].mxu1 }
 0x7b7   : > { %v1683_v37 = vadd.f32 %v1682_v36, %v3203_v39  ;;  %v2427_v38 = vpop.f32.mrb[9].mxu1 }
 0x7b9   : > { %v1686_v40 = vsel %vm893_vm2, %v1683_v37, -inf }
 0x7ba   : > { %1687 = vmax.xlane.f32.xlu0 %v1686_v40  ;;  %v1980_v40 = vld [vmem:[%s3493_s13 + $0x70] sm:$0xff] }
 0x847   : > { %v1688_v41 = vpop.xlane.xlu0 %1687 }
 0x848   : > { %v1689_v42 = vsub.f32 %v1683_v37, %v1688_v41  ;;  %v2274_v37 = vld [vmem:[%s3495_s9] ss:$0 sm:$0xff]  ;;  %v1981_v41 = vld [vmem:[%s3493_s13 + $0x78] sm:$0xff]  ;;  %s3500_s9 = sld [smem:[#allocation26_spill]] }
 0x84a   : > { %v1690_v43 = vmul.f32 1.442695, %v1689_v42  ;;  %v2530_v42 = vpack.c.bf16 %v1981_v41, %v1980_v40 }
 0x84c   : > { %2622 = vpow2.f32 %v1690_v43  ;;  %v2275_v43 = vld [vmem:[%s3496_s27] ss:$0 sm:$0xff]  ;;  %s3376_s27 = scalar_lea.hbm %s3501_s0, %s2281_s29 }
 0x856   : > { %v2623_v44 = vpop.eup %2622 }
 0x857   : > { %v1692_v45 = vsel %vm893_vm2, %v2623_v44, 0.0 }
 0x858   : > { %1693 = vadd.xlane.f32.xlu1 %v1692_v45 }
 0x869   : > { %1697 = vrot.lane.b32.xlu1 %v3180_v29, %s2816_s20  ;;  %s635_s20 = scalar_lea.vmem [#allocation10], %s3098_s21  ;;  %s2724_s21 = sshll.u32 %s2817_s24, 4  ;;  %s2725_s21 = int_to_ptr.vmem [resolvable:$false] %s2724_s21 }
 0x86a   : > { %s2107_s12 = sshll.u32 %s635_s20, 4  ;;  %s3378_s12 = int_to_ptr.vmem [resolvable:$true] %s2107_s12 }
 0x86b   : > { %s2720_s14 = scalar_lea.vmem %s3378_s12, 128  ;;  %p2727_p9 = scmp.lt.s32.totalorder %s3378_s12, %s2725_s21 }
 0x86c   : > { %p2721_p10 = scmp.ne.s32.totalorder %s3378_s12, %s2720_s14 }
 0x86e   : > { %p2722_p1 = pnand %p2721_p10, %p3502_p12 }
 0x870   : > { %p2723_p8 = pneg %p2722_p1 }
 0x886   : > { %v1603_v39 = vpop.f32.mrb[14].mxu0 }
 0x887   : > { %v1607_v47 = vadd.f32 %v1603_v39, %v1365_v15  ;;  %v2422_v48 = vpop.f32.mrb[15].mxu0  ;;  %v1974_v15 = vld [vmem:[%s3493_s13 + $0x40] sm:$0xff] }
 0x888   : > { %v2521_v17 = vpack.c.bf16 %v1975_v16, %v1974_v15 }
 0x8e5   : > { %v1694_v49 = vpop.xlane.xlu1 %1693 }
 0x8e6   : > { %2624 = vrcp.f32 %v1694_v49 }
 0x8e9   : > { %v1698_v50 = vpop.permute.xlu1 %1697 }
 0x8ea   : > { %2429 = vmatpush3.msra.mxu0 %v1698_v50 }
 0x8eb   : > { %2502 = vmatprep.subr.bf16.mxu0 %v2811_v0 }
 0x8f0   : > { %v2625_v51 = vpop.eup %2624 }
 0x8f1   : > { %v1696_v52 = vmul.f32 %v2625_v51, %v2623_v44 }
 0x8f3   : > { %2431 = vmatmul.mubr.msk.f32.vlgmr.msra.gmra.mrb[16].mxu0 %vm893_vm2, %v1696_v52 }
 0x8f4   : > { %2446 = vmatprep.mubr.msk.f32.mxu0 %vm2812_vm0, %v2813_v1 }
 0x9c6   : > { %v1769_v29 = vpop.f32.mrb[16].mxu0 }
 0x9c7   : > { %v2432_v53 = vpop.f32.mrb[17].mxu0  ;;  %2436 = vmatmul.mubr.msk.f32.vlgmr.msra.gmra.mrb[10].mxu1 %vm893_vm2, %v1769_v29 }
 0x9c8   : > { %2481 = vmatprep.mubr.msk.f32.mxu1 %vm2812_vm0, %v2813_v1  ;;  %v1882_v1 = vld [vmem:[%s3492_s15 + $0x8] sm:$0xff]  ;;  %2510 = vmatpush3.bf16.msra.mxu1 %v2509_v6 }
 0x9c9   : > { %v2503_v62 = vpack.c.bf16 %v1882_v1, %v1881_v61  ;;  %2511 = vmatprep.subr.bf16.mxu1 %v2811_v0 }
 0x9cb   : > { %2504 = vmatpush3.bf16.msra.mxu0 %v2503_v62  ;;  %v2278_v62 = vld [vmem:[%s3499_s30] ss:$0 sm:$0xff] }
 0x9cc   : > { %2505 = vmatprep.subr.bf16.mxu0 %v2811_v0  ;;  %2513 = vmatpush3.bf16.msra.mxu1 %v2512_v8 }
 0x9cd   : > { %2514 = vmatprep.subr.bf16.mxu1 %v2811_v0 }
 0x9d0   : > { %2516 = vmatpush3.bf16.msra.mxu1 %v2515_v11 }
 0x9d1   : > { %2517 = vmatprep.subr.bf16.mxu1 %v2811_v0 }
 0x9d4   : > { %2519 = vmatpush3.bf16.msra.mxu1 %v2518_v14 }
 0x9d5   : > { %2520 = vmatprep.subr.bf16.mxu1 %v2811_v0 }
 0x9d8   : > { %2522 = vmatpush3.bf16.msra.mxu1 %v2521_v17 }
 0x9d9   : > { %2523 = vmatprep.subr.bf16.mxu1 %v2811_v0 }
 0x9dc   : > { %2525 = vmatpush3.bf16.msra.mxu1 %v2524_v20 }
 0x9dd   : > { %2526 = vmatprep.subr.bf16.mxu1 %v2811_v0 }
 0x9e0   : > { %2528 = vmatpush3.bf16.msra.mxu1 %v2527_v24 }
 0x9e1   : > { %2529 = vmatprep.subr.bf16.mxu1 %v2811_v0 }
 0x9e4   : > { %2531 = vmatpush3.bf16.msra.mxu1 %v2530_v42 }
 0xa9a   : > { %v1843_v54 = vpop.f32.mrb[10].mxu1 }
 0xa9b   : > { %v1847_v55 = vadd.f32 %v1843_v54, %v1607_v47  ;;  %v2437_v56 = vpop.f32.mrb[11].mxu1  ;;  %v2277_v47 = vld [vmem:[%s3497_s18] ss:$0 sm:$0xff]  ;;  %s2726_s18 = scalar_lea.vmem %s2725_s21, 256 }
 0xa9c   : > { %p2728_p6 = scmp.lt.s32.totalorder %s2726_s18, %s2720_s14 }
 0xa9d   : > { %v1848_v57 = vadd.f32 %v1847_v55, %v3168_v22  ;;  %v1883_v22 = vld [vmem:[%s3492_s15 + $0x10] sm:$0xff] }
 0xa9e   : > { %v2506_v2 = vpack.c.bf16 %v1884_v63, %v1883_v22  ;;  %v2279_v63 = vld [vmem:[%s3500_s9] ss:$0 sm:$0xff]  ;;  %p2729_p13 = por %p2728_p6, %p2727_p9 }
 0xa9f   : > { %v1849_v58 = vsel %vm649_vm1, %v1848_v57, 0.0  ;;  %v1854_v59 = vmul.f32 %v1848_v57, %v1848_v57 }
 0xaa0   : > { %1850 = vadd.xlane.f32.xlu1 %v1849_v58  ;;  %2507 = vmatpush3.bf16.msra.mxu0 %v2506_v2  ;;  %p2730_p11 = pnand %p2729_p13, %p2723_p8 }
 0xaa1   : > { %v1855_v60 = vsel %vm649_vm1, %v1854_v59, 0.0 }
 0xaa2   : > { %1856 = vadd.xlane.f32.xlu0 %v1855_v60 }
 0xb2d   : > { %v1851_v25 = vpop.xlane.xlu1 %1850 }
 0xb2e   : > { %v1853_v26 = vmul.f32 0.03125, %v1851_v25 }
 0xb2f   : > { %v1857_v27 = vpop.xlane.xlu0 %1856 }
 0xb30   : > { %v1859_v28 = vmul.f32 %v1853_v26, %v1853_v26  ;;  %v1858_v31 = vmul.f32 0.03125, %v1857_v27  ;;  %v1861_v30 = vsub.f32 %v1848_v57, %v1853_v26 }
 0xb32   : > { %v1860_v32 = vsub.f32 %v1858_v31, %v1859_v28 }
 0xb34   : > { %v1862_v33 = vadd.f32 1e-05, %v1860_v32 }
 0xb36   : > { %2626 = vrsqrt.f32 %v1862_v33 }
 0xb40   : > { %v2627_v34 = vpop.eup %2626 }
 0xb41   : > { %v1864_v36 = vmul.f32 %v2627_v34, %v1861_v30 }
 0xb43   : > { %v1872_v0 = vmul.f32 %v2273_v35, %v1864_v36 }
 0xb45   : > { %v1880_v38 = vadd.f32 %v2274_v37, %v1872_v0 }
 0xb47   : > { %2447 = vmatmul.mubr.msk.f32.vlgmr.msra.gmra.mrb[18].mxu0 %vm649_vm1, %v1880_v38 }
 0xc1a   : > { %v1961_v44 = vpop.f32.mrb[18].mxu0 }
 0xc1b   : > { %v1962_v45 = vadd.f32 %v2275_v43, %v1961_v44  ;;  %v2448_v46 = vpop.f32.mrb[19].mxu0 }
 0xc1d   : > { %v1965_v39 = vmax.f32 %v1962_v45, 0.0 }
 0xc1f   : > { %2482 = vmatmul.mubr.f32.vlgmr.msra.gmra.mrb[12].mxu1 %v1965_v39 }
 0xcf2   : > { %v2055_v48 = vpop.f32.mrb[12].mxu1 }
 0xcf3   : > { %v2056_v49 = vadd.f32 %v2277_v47, %v2055_v48  ;;  %v2483_v50 = vpop.f32.mrb[13].mxu1 }
 0xcf5   : > { %v2059_v51 = vadd.f32 %v2056_v49, %v1880_v38 }
 0xcf7   : > { %v2060_v52 = vsel %vm649_vm1, %v2059_v51, 0.0  ;;  %v2064_v29 = vmul.f32 %v2059_v51, %v2059_v51 }
 0xcf8   : > { %2061 = vadd.xlane.f32.xlu0 %v2060_v52 }
 0xcf9   : > { %v2065_v53 = vsel %vm649_vm1, %v2064_v29, 0.0 }
 0xcfc   : > { %2066 = vadd.xlane.f32.xlu0 %v2065_v53 }
 0xd85   : > { %v2062_v54 = vpop.xlane.xlu0 %2061 }
 0xd86   : > { %v2063_v55 = vmul.f32 0.03125, %v2062_v54 }
 0xd88   : > { %v2069_v57 = vmul.f32 %v2063_v55, %v2063_v55  ;;  %v2071_v61 = vsub.f32 %v2059_v51, %v2063_v55 }
 0xd89   : > { %v2067_v56 = vpop.xlane.xlu0 %2066 }
 0xd8a   : > { %v2068_v58 = vmul.f32 0.03125, %v2067_v56 }
 0xd8c   : > { %v2070_v59 = vsub.f32 %v2068_v58, %v2069_v57 }
 0xd8e   : > { %v2072_v60 = vadd.f32 1e-05, %v2070_v59 }
 0xd90   : > { %2628 = vrsqrt.f32 %v2072_v60 }
 0xd9a   : > { %v2629_v1 = vpop.eup %2628 }
 0xd9b   : > { %v2074_v22 = vmul.f32 %v2629_v1, %v2071_v61 }
 0xd9d   : > { %v2082_v2 = vmul.f32 %v2278_v62, %v2074_v22 }
 0xd9f   : > { %v2090_v3 = vadd.f32 %v2279_v63, %v2082_v2 }
 0xda1   : > { %2091 = vst.msk [vmem:[%s635_s20] sm:$0xff] %vm649_vm1, %v2090_v3 }
 0xda2   : > { %2733 = shalt.err (!%p2730_p11)
}
 0xda3   : > { %s2734_s19 = scalar_lea.hbm %s3376_s27, 128  ;;  %s2738_s30 = scalar_lea.hbm %s3501_s0, 256 }
 0xda4   : > { %p2735_p2 = scmp.ne.s32.totalorder %s3376_s27, %s2734_s19  ;;  %p2739_p3 = scmp.lt.u32.totalorder %s3376_s27, %s3501_s0 }
 0xda5   : > { %p2740_p0 = scmp.lt.u32.totalorder %s2738_s30, %s2734_s19  ;;  %p2742_p10 = scmp.lt.u32.totalorder %s2734_s19, %s3376_s27 }
 0xda6   : > { %p2736_p5 = pnand %p2735_p2, %p3502_p12 }
 0xda7   : > { %p2741_p4 = por %p2740_p0, %p2739_p3 }
 0xda8   : > { %p2737_p7 = pneg %p2736_p5 }
 0xda9   : > { %p2743_p1 = por %p2742_p10, %p2741_p4 }
 0xdab   : > { %p2744_p8 = pnand %p2743_p1, %p2737_p7 }
 0xdad   : > { %2747 = shalt.err (!%p2744_p8)
}
 0xdae   : > { %2538 = dma.vmem_to_hbm [thread:$0]  (%p3502_p12), %s3378_s12, 128, %s3376_s27, %s2093_s10  }
 0xdaf PF: > { %s3503_s9 = sld [smem:[#allocation14_spill]]  ;;  %s3504_s29 = sld [smem:[#allocation20_spill]] }
 0xdb0   : > { %s3505_s20 = sld [smem:[#allocation16_spill]] }
 0xdb5   : > { %s2119_s1 = sand.u32 1, %s3503_s9   ;;  %p3506_p9 = scmp.ne.s32.totalorder %s3504_s29, 0 }
 0xdb6   : > { %p3507_p6 = scmp.ge.s32.totalorder %s3505_s20, 2  ;;  %s2120_s11 = scalar_lea.sflag [#allocation6], %s2119_s1 }
 0xdb8   : > { %p2551_p13 = pnand %p3507_p6, %p3506_p9 }
 0xdba   : > { %2781 = dma.done.wait (!%p2551_p13), %s2120_s11, 128  }
 0xdbb   : > { %2783 = vsyncadd (!%p2551_p13), %s2120_s11, 4294967168  ;;  %s35_s26 = sadd.s32 1, %s3505_s20   ;;  %s3508_s25 = sld [smem:[#allocation19_spill]] }
 0xdbc   : > { %p32_p11 = scmp.ge.s32.totalorder %s35_s26, 4   ;;  %s3509_s24 = sld [smem:[#allocation15_spill]] }
 0xdbd   : > { %s3510_s14 = sld [smem:[#allocation17_spill]]  ;;  %s3511_s21 = smov %s2790_s22 }
 0xdbe   : > { %s3512_s22 = smov %s2794_s23  ;;  %34 = sbr.rel (!%p32_p11) target bundleno = 20 (0x14), region = 160 }
 0xdc1   : > { %s3513_s23 = smov %s3508_s25 }
 0xdc3   : > { %s3514_s25 = smov %s3510_s14 }
 0xdc5   :  { %2125 = vsyncpa [#allocation5], 1 }
 0xdc6   :  { %2127 = vsyncpa [#allocation5 + $0x1], 1 }
 0xdc7   :  { %2128 = vsyncpa [#allocation8], 1 }
 0xdc8   :  { %2130 = vsyncpa [#allocation8 + $0x1], 1 }
 0xdc9   :  { %2131 = vsyncpa [#allocation6], 1 }
 0xdca   :  { %2133 = vsyncpa [#allocation6 + $0x1], 1 }

</bundles_post_ra>
